<compile_context>
chip_gen: v6e
topology: v6e:2x2x1
jax: 0.10.0
libtpu: 0.0.40
codegen_flags: <defaults>
</compile_context>

<pallas_src>
from functools import reduce
from operator import mul

import jax
import jax.numpy as jnp
from jax.experimental import pallas as pl
from jax.experimental.pallas import tpu as pltpu

HIDDEN = 512
OUT_PAD = 128    # last Linear has 1 output; padded to one full 128-lane slab
EMB_PAD = 128    # label-embedding features padded to one lane slab
NEG_SLOPE = 0.2
TB_CAP = 512     # max batch rows per grid step

_HAS_BUFFERED = hasattr(pl, "Buffered")


def _round_up(x, m):
    return (x + m - 1) // m * m


def _leaky_relu(x, slope):
    return jnp.where(x > 0, x, slope * x)


def discriminator_kernel(x_ref, w1_ref, b1_ref, w2_ref, b2_ref,
                         w3_ref, b3_ref, w4_ref, b4_ref, o_ref):
    """One batch tile of the 4-layer MLP.

    x_ref already holds the padded concat of [flattened img | label embedding]
    and w1_ref the matching vertically stacked layer-1 weight, so layer 1 is a
    single MXU call. bf16 operands, f32 accumulation. Dropout = identity
    (eval-mode).
    """
    # Layer 1
    h = jnp.dot(x_ref[...], w1_ref[...], preferred_element_type=jnp.float32)
    h = _leaky_relu(h + b1_ref[...], NEG_SLOPE)

    # Layer 2 (+ Dropout(0.4) -> identity in eval mode)
    h = jnp.dot(h.astype(jnp.bfloat16), w2_ref[...],
                preferred_element_type=jnp.float32)
    h = _leaky_relu(h + b2_ref[...], NEG_SLOPE)

    # Layer 3 (+ Dropout(0.4) -> identity in eval mode)
    h = jnp.dot(h.astype(jnp.bfloat16), w3_ref[...],
                preferred_element_type=jnp.float32)
    h = _leaky_relu(h + b3_ref[...], NEG_SLOPE)

    # Layer 4 (output; only lane 0 of OUT_PAD is the real logit)
    out = jnp.dot(h.astype(jnp.bfloat16), w4_ref[...],
                  preferred_element_type=jnp.float32)
    o_ref[...] = (out + b4_ref[...]).astype(o_ref.dtype)


def init_params(key, n_classes, img_shape):
    """Deterministic synthetic f32 parameters matching the torch module shapes."""
    flat_dim = int(reduce(mul, img_shape))
    in_dim = n_classes + flat_dim
    ks = jax.random.split(key, 9)

    def lin(kw, kb, fan_in, fan_out):
        bound = 1.0 / jnp.sqrt(fan_in)
        w = jax.random.uniform(kw, (fan_in, fan_out), jnp.float32, -bound, bound)
        b = jax.random.uniform(kb, (fan_out,), jnp.float32, -bound, bound)
        return w, b

    emb = jax.random.normal(ks[0], (n_classes, n_classes), jnp.float32)
    w1, b1 = lin(ks[1], ks[2], in_dim, HIDDEN)
    w2, b2 = lin(ks[3], ks[4], HIDDEN, HIDDEN)
    w3, b3 = lin(ks[5], ks[6], HIDDEN, HIDDEN)
    w4, b4 = lin(ks[7], ks[8], HIDDEN, 1)
    return {"embedding": emb, "w1": w1, "b1": b1, "w2": w2, "b2": b2,
            "w3": w3, "b3": b3, "w4": w4, "b4": b4}


def prepare_params(params, n_classes, img_shape):
    """One-time padding + bf16 cast of all kernel-side weights (load time)."""
    flat_dim = int(reduce(mul, img_shape))
    d_img = _round_up(flat_dim, 128)
    d_in = d_img + EMB_PAD

    # Embedding table padded on the feature axis so gathered rows are already
    # lane-dense [B, EMB_PAD] bf16 (ready to drop into the input slab).
    emb_tbl = (jnp.zeros((n_classes, EMB_PAD), jnp.float32)
               .at[:, :n_classes].set(params["embedding"])
               .astype(jnp.bfloat16))

    # Layer-1 weight: img rows first (padded to d_img), then emb rows under
    # them -> matches the [img | emb] input slab; single MXU call in-kernel.
    w1 = params["w1"]  # [flat_dim + n_classes, HIDDEN]
    w1c = (jnp.zeros((d_in, HIDDEN), jnp.float32)
           .at[:flat_dim].set(w1[:flat_dim])
           .at[d_img:d_img + n_classes].set(w1[flat_dim:])
           .astype(jnp.bfloat16))

    w4 = (jnp.zeros((HIDDEN, OUT_PAD), jnp.float32)
          .at[:, :1].set(params["w4"])
          .astype(jnp.bfloat16))
    b4 = (jnp.zeros((1, OUT_PAD), jnp.float32)
          .at[:, :1].set(params["b4"].reshape(1, 1)))

    return {
        "emb_tbl": emb_tbl,
        "w1": w1c,
        "b1": params["b1"].reshape(1, HIDDEN).astype(jnp.float32),
        "w2": params["w2"].astype(jnp.bfloat16),
        "b2": params["b2"].reshape(1, HIDDEN).astype(jnp.float32),
        "w3": params["w3"].astype(jnp.bfloat16),
        "b3": params["b3"].reshape(1, HIDDEN).astype(jnp.float32),
        "w4": w4,
        "b4": b4,
    }


@jax.jit
def discriminator_forward(img, labels, prepped):
    """img: [B, C, H, W] float32 (NCHW); labels: [B, 1] int32 -> [B, 1] f32."""
    B = img.shape[0]
    flat_dim = int(reduce(mul, img.shape[1:]))
    d_img = _round_up(flat_dim, 128)
    d_in = d_img + EMB_PAD

    # --- batch tiling: cap at TB_CAP rows, minimize over-padding, and keep
    # n_blk >= 2 when B > 16 so both v7x TensorCores get a tile. -------------
    n_blk = max(pl.cdiv(B, TB_CAP), 1)
    if B > 16:
        n_blk = max(n_blk, 2)
    TB = _round_up(pl.cdiv(B, n_blk), 16)   # multiple of 16 (bf16 sublanes)
    n_blk = pl.cdiv(B, TB)
    Bp = TB * n_blk

    # --- input slab: single fused pad + bf16 cast + concat pass -------------
    x_img = jnp.pad(img.reshape(B, flat_dim).astype(jnp.bfloat16),
                    ((0, Bp - B), (0, d_img - flat_dim)))
    emb = jnp.take(prepped["emb_tbl"], labels.reshape(-1), axis=0)  # [B, EMB_PAD] bf16
    x_emb = jnp.pad(emb, ((0, Bp - B), (0, 0)))
    x = jnp.concatenate([x_img, x_emb], axis=-1)                    # [Bp, d_in] bf16

    row_map = lambda i: (i, 0)     # batch-tiled
    fixed_map = lambda i: (0, 0)   # resident across the whole grid

    # --- generation-aware VMEM budget ---------------------------------------
    try:
        vmem_cap = int(pltpu.get_tpu_info().vmem_capacity_bytes)
    except Exception:  # pragma: no cover - conservative fallback
        vmem_cap = 64 << 20
    vmem_hi = min(48 << 20, vmem_cap // 2)   # ~32 MiB on v7x, 48 MiB on v5e/v6e

    w_elems = d_in * HIDDEN + 2 * HIDDEN * HIDDEN + HIDDEN * OUT_PAD
    # Single-buffer the constant-index weights only when they would actually
    # pressure VMEM (large d_img); keep the default path for small models.
    single_w = _HAS_BUFFERED and (2 * 2 * w_elems > vmem_cap // 4)
    wbuf = 1 if single_w else 2
    w_bytes = wbuf * 2 * w_elems
    b_bytes = wbuf * 4 * (3 * HIDDEN + OUT_PAD)
    x_bytes = 2 * TB * d_in * 2        # double-buffered bf16 input tile
    o_bytes = 2 * TB * OUT_PAD * 2     # double-buffered bf16 output tile
    act_bytes = 4 * TB * HIDDEN * 4    # f32 intermediates headroom
    vmem_budget = int(min(max(w_bytes + b_bytes + x_bytes + o_bytes
                              + act_bytes + (4 << 20), 8 << 20), vmem_hi))

    def w_spec(shape):
        if single_w:
            return pl.BlockSpec(shape, fixed_map, pipeline_mode=pl.Buffered(1))
        return pl.BlockSpec(shape, fixed_map)

    in_specs = [
        pl.BlockSpec((TB, d_in), row_map),   # x slab (auto double-buffered)
        w_spec((d_in, HIDDEN)),              # w1 (img + emb stacked)
        w_spec((1, HIDDEN)),                 # b1
        w_spec((HIDDEN, HIDDEN)),            # w2
        w_spec((1, HIDDEN)),                 # b2
        w_spec((HIDDEN, HIDDEN)),            # w3
        w_spec((1, HIDDEN)),                 # b3
        w_spec((HIDDEN, OUT_PAD)),           # w4
        w_spec((1, OUT_PAD)),                # b4
    ]

    out_pad = pl.pallas_call(
        discriminator_kernel,
        out_shape=jax.ShapeDtypeStruct((Bp, OUT_PAD), jnp.bfloat16),
        grid=(n_blk,),
        in_specs=in_specs,
        out_specs=pl.BlockSpec((TB, OUT_PAD), row_map),
        compiler_params=pltpu.CompilerParams(
            dimension_semantics=("parallel",),   # megacore shards batch tiles
            vmem_limit_bytes=vmem_budget,
        ),
    )(x,
      prepped["w1"], prepped["b1"],
      prepped["w2"], prepped["b2"],
      prepped["w3"], prepped["b3"],
      prepped["w4"], prepped["b4"])

    return out_pad[:B, :1].astype(jnp.float32)   # [B, 1]


def _reference(img, labels, params):
    """Pure-JAX f32 reference (matches the torch module's eval-mode forward)."""
    B = img.shape[0]
    x = img.reshape(B, -1)
    emb = jnp.take(params["embedding"], labels[:, 0], axis=0)
    h = jnp.concatenate([x, emb], axis=-1)
    h = _leaky_relu(h @ params["w1"] + params["b1"], NEG_SLOPE)
    h = _leaky_relu(h @ params["w2"] + params["b2"], NEG_SLOPE)
    h = _leaky_relu(h @ params["w3"] + params["b3"], NEG_SLOPE)
    return h @ params["w4"] + params["b4"]


if __name__ == "__main__":
    n_classes = 10
    img_shape = (1, 16, 16)   # (C, H, W)
    B = 2

    key = jax.random.PRNGKey(0)
    kp, ki, kl = jax.random.split(key, 3)

    params = init_params(kp, n_classes, img_shape)
    prepped = prepare_params(params, n_classes, img_shape)

    img = jax.random.normal(ki, (B,) + img_shape, jnp.float32)        # NCHW
    labels = jax.random.randint(kl, (B, 1), 0, n_classes, jnp.int32)

    out = jax.block_until_ready(discriminator_forward(img, labels, prepped))

    ref = _reference(img, labels, params)
    assert out.shape == (B, 1), out.shape
    # bf16 MXU path (and bf16 output store) vs f32 reference -> loose tolerance.
    assert jnp.allclose(out, ref, atol=3e-2, rtol=3e-2), (out, ref)
    print("KERNEL_OK")
</pallas_src>

<mosaic_0001>
module attributes {stable_mosaic.version = 11 : i64} {
  func.func @discriminator_kernel(%arg0: i32, %arg1: memref<16x384xbf16, #tpu.memory_space<vmem>>, %arg2: memref<384x512xbf16, #tpu.memory_space<vmem>>, %arg3: memref<1x512xf32, #tpu.memory_space<vmem>>, %arg4: memref<512x512xbf16, #tpu.memory_space<vmem>>, %arg5: memref<1x512xf32, #tpu.memory_space<vmem>>, %arg6: memref<512x512xbf16, #tpu.memory_space<vmem>>, %arg7: memref<1x512xf32, #tpu.memory_space<vmem>>, %arg8: memref<512x128xbf16, #tpu.memory_space<vmem>>, %arg9: memref<1x128xf32, #tpu.memory_space<vmem>>, %arg10: memref<16x128xbf16, #tpu.memory_space<vmem>>) attributes {dimension_semantics = [#tpu.dimension_semantics<parallel>], iteration_bounds = array<i64: 1>, scalar_prefetch = 0 : i64, scratch_operands = 0 : i64, tpu.core_type = #tpu.core_type<tc>, window_params = [{transform_indices = @transform_0, window_bounds = array<i64: 16, 384>}, {pipeline_mode = #tpu.pipeline_mode<synchronous>, transform_indices = @transform_1, window_bounds = array<i64: 384, 512>}, {pipeline_mode = #tpu.pipeline_mode<synchronous>, transform_indices = @transform_2, window_bounds = array<i64: 1, 512>}, {pipeline_mode = #tpu.pipeline_mode<synchronous>, transform_indices = @transform_3, window_bounds = array<i64: 512, 512>}, {pipeline_mode = #tpu.pipeline_mode<synchronous>, transform_indices = @transform_4, window_bounds = array<i64: 1, 512>}, {pipeline_mode = #tpu.pipeline_mode<synchronous>, transform_indices = @transform_5, window_bounds = array<i64: 512, 512>}, {pipeline_mode = #tpu.pipeline_mode<synchronous>, transform_indices = @transform_6, window_bounds = array<i64: 1, 512>}, {pipeline_mode = #tpu.pipeline_mode<synchronous>, transform_indices = @transform_7, window_bounds = array<i64: 512, 128>}, {pipeline_mode = #tpu.pipeline_mode<synchronous>, transform_indices = @transform_8, window_bounds = array<i64: 1, 128>}, {transform_indices = @transform_9, window_bounds = array<i64: 16, 128>}]} {
    %c0 = arith.constant 0 : index
    %c0_0 = arith.constant 0 : index
    %0 = vector.load %arg1[%c0, %c0_0] : memref<16x384xbf16, #tpu.memory_space<vmem>>, vector<16x384xbf16>
    %c0_1 = arith.constant 0 : index
    %c0_2 = arith.constant 0 : index
    %1 = vector.load %arg2[%c0_1, %c0_2] : memref<384x512xbf16, #tpu.memory_space<vmem>>, vector<384x512xbf16>
    %cst = arith.constant dense<0.000000e+00> : vector<16x512xf32>
    %2 = tpu.matmul %0, %1, %cst {dimension_numbers = #tpu.dot_dimension_numbers<[1], [0], [0], [1], [0, 0, 1, 1], [], []>} : vector<16x384xbf16>, vector<384x512xbf16>, vector<16x512xf32> -> vector<16x512xf32>
    %c0_3 = arith.constant 0 : index
    %c0_4 = arith.constant 0 : index
    %3 = vector.load %arg3[%c0_3, %c0_4] : memref<1x512xf32, #tpu.memory_space<vmem>>, vector<1x512xf32>
    %4 = vector.broadcast %3 : vector<1x512xf32> to vector<16x512xf32>
    %5 = arith.addf %2, %4 : vector<16x512xf32>
    %cst_5 = arith.constant 0.000000e+00 : f32
    %6 = vector.broadcast %cst_5 : f32 to vector<16x512xf32>
    %7 = arith.cmpf ogt, %5, %6 : vector<16x512xf32>
    %cst_6 = arith.constant 2.000000e-01 : f32
    %8 = vector.broadcast %cst_6 : f32 to vector<16x512xf32>
    %9 = arith.mulf %8, %5 : vector<16x512xf32>
    %10 = arith.select %7, %5, %9 : vector<16x512xi1>, vector<16x512xf32>
    %11 = arith.truncf %10 : vector<16x512xf32> to vector<16x512xbf16>
    %c0_7 = arith.constant 0 : index
    %c0_8 = arith.constant 0 : index
    %12 = vector.load %arg4[%c0_7, %c0_8] : memref<512x512xbf16, #tpu.memory_space<vmem>>, vector<512x512xbf16>
    %cst_9 = arith.constant dense<0.000000e+00> : vector<16x512xf32>
    %13 = tpu.matmul %11, %12, %cst_9 {dimension_numbers = #tpu.dot_dimension_numbers<[1], [0], [0], [1], [0, 0, 1, 1], [], []>} : vector<16x512xbf16>, vector<512x512xbf16>, vector<16x512xf32> -> vector<16x512xf32>
    %c0_10 = arith.constant 0 : index
    %c0_11 = arith.constant 0 : index
    %14 = vector.load %arg5[%c0_10, %c0_11] : memref<1x512xf32, #tpu.memory_space<vmem>>, vector<1x512xf32>
    %15 = vector.broadcast %14 : vector<1x512xf32> to vector<16x512xf32>
    %16 = arith.addf %13, %15 : vector<16x512xf32>
    %cst_12 = arith.constant 0.000000e+00 : f32
    %17 = vector.broadcast %cst_12 : f32 to vector<16x512xf32>
    %18 = arith.cmpf ogt, %16, %17 : vector<16x512xf32>
    %cst_13 = arith.constant 2.000000e-01 : f32
    %19 = vector.broadcast %cst_13 : f32 to vector<16x512xf32>
    %20 = arith.mulf %19, %16 : vector<16x512xf32>
    %21 = arith.select %18, %16, %20 : vector<16x512xi1>, vector<16x512xf32>
    %22 = arith.truncf %21 : vector<16x512xf32> to vector<16x512xbf16>
    %c0_14 = arith.constant 0 : index
    %c0_15 = arith.constant 0 : index
    %23 = vector.load %arg6[%c0_14, %c0_15] : memref<512x512xbf16, #tpu.memory_space<vmem>>, vector<512x512xbf16>
    %cst_16 = arith.constant dense<0.000000e+00> : vector<16x512xf32>
    %24 = tpu.matmul %22, %23, %cst_16 {dimension_numbers = #tpu.dot_dimension_numbers<[1], [0], [0], [1], [0, 0, 1, 1], [], []>} : vector<16x512xbf16>, vector<512x512xbf16>, vector<16x512xf32> -> vector<16x512xf32>
    %c0_17 = arith.constant 0 : index
    %c0_18 = arith.constant 0 : index
    %25 = vector.load %arg7[%c0_17, %c0_18] : memref<1x512xf32, #tpu.memory_space<vmem>>, vector<1x512xf32>
    %26 = vector.broadcast %25 : vector<1x512xf32> to vector<16x512xf32>
    %27 = arith.addf %24, %26 : vector<16x512xf32>
    %cst_19 = arith.constant 0.000000e+00 : f32
    %28 = vector.broadcast %cst_19 : f32 to vector<16x512xf32>
    %29 = arith.cmpf ogt, %27, %28 : vector<16x512xf32>
    %cst_20 = arith.constant 2.000000e-01 : f32
    %30 = vector.broadcast %cst_20 : f32 to vector<16x512xf32>
    %31 = arith.mulf %30, %27 : vector<16x512xf32>
    %32 = arith.select %29, %27, %31 : vector<16x512xi1>, vector<16x512xf32>
    %33 = arith.truncf %32 : vector<16x512xf32> to vector<16x512xbf16>
    %c0_21 = arith.constant 0 : index
    %c0_22 = arith.constant 0 : index
    %34 = vector.load %arg8[%c0_21, %c0_22] : memref<512x128xbf16, #tpu.memory_space<vmem>>, vector<512x128xbf16>
    %cst_23 = arith.constant dense<0.000000e+00> : vector<16x128xf32>
    %35 = tpu.matmul %33, %34, %cst_23 {dimension_numbers = #tpu.dot_dimension_numbers<[1], [0], [0], [1], [0, 0, 1, 1], [], []>} : vector<16x512xbf16>, vector<512x128xbf16>, vector<16x128xf32> -> vector<16x128xf32>
    %c0_24 = arith.constant 0 : index
    %c0_25 = arith.constant 0 : index
    %36 = vector.load %arg9[%c0_24, %c0_25] : memref<1x128xf32, #tpu.memory_space<vmem>>, vector<1x128xf32>
    %37 = vector.broadcast %36 : vector<1x128xf32> to vector<16x128xf32>
    %38 = arith.addf %35, %37 : vector<16x128xf32>
    %39 = arith.truncf %38 : vector<16x128xf32> to vector<16x128xbf16>
    %c0_26 = arith.constant 0 : index
    %c0_27 = arith.constant 0 : index
    %40 = vector.load %arg10[%c0_26, %c0_27] : memref<16x128xbf16, #tpu.memory_space<vmem>>, vector<16x128xbf16>
    tpu.vector_store %arg10[%c0_26, %c0_27], %39 {strides = array<i32>} : memref<16x128xbf16, #tpu.memory_space<vmem>>, vector<16x128xbf16>,
    return
  }
  func.func @transform_0(%arg0: i32) -> (i32, i32) {
    %c0_i32 = arith.constant 0 : i32
    %c0_i32_0 = arith.constant 0 : i32
    return %arg0, %c0_i32 : i32, i32
  }
  func.func @transform_1(%arg0: i32) -> (i32, i32) {
    %c0_i32 = arith.constant 0 : i32
    %c0_i32_0 = arith.constant 0 : i32
    %c0_i32_1 = arith.constant 0 : i32
    return %c0_i32, %c0_i32_0 : i32, i32
  }
  func.func @transform_2(%arg0: i32) -> (i32, i32) {
    %c0_i32 = arith.constant 0 : i32
    %c0_i32_0 = arith.constant 0 : i32
    %c0_i32_1 = arith.constant 0 : i32
    return %c0_i32, %c0_i32_0 : i32, i32
  }
  func.func @transform_3(%arg0: i32) -> (i32, i32) {
    %c0_i32 = arith.constant 0 : i32
    %c0_i32_0 = arith.constant 0 : i32
    %c0_i32_1 = arith.constant 0 : i32
    return %c0_i32, %c0_i32_0 : i32, i32
  }
  func.func @transform_4(%arg0: i32) -> (i32, i32) {
    %c0_i32 = arith.constant 0 : i32
    %c0_i32_0 = arith.constant 0 : i32
    %c0_i32_1 = arith.constant 0 : i32
    return %c0_i32, %c0_i32_0 : i32, i32
  }
  func.func @transform_5(%arg0: i32) -> (i32, i32) {
    %c0_i32 = arith.constant 0 : i32
    %c0_i32_0 = arith.constant 0 : i32
    %c0_i32_1 = arith.constant 0 : i32
    return %c0_i32, %c0_i32_0 : i32, i32
  }
  func.func @transform_6(%arg0: i32) -> (i32, i32) {
    %c0_i32 = arith.constant 0 : i32
    %c0_i32_0 = arith.constant 0 : i32
    %c0_i32_1 = arith.constant 0 : i32
    return %c0_i32, %c0_i32_0 : i32, i32
  }
  func.func @transform_7(%arg0: i32) -> (i32, i32) {
    %c0_i32 = arith.constant 0 : i32
    %c0_i32_0 = arith.constant 0 : i32
    %c0_i32_1 = arith.constant 0 : i32
    return %c0_i32, %c0_i32_0 : i32, i32
  }
  func.func @transform_8(%arg0: i32) -> (i32, i32) {
    %c0_i32 = arith.constant 0 : i32
    %c0_i32_0 = arith.constant 0 : i32
    %c0_i32_1 = arith.constant 0 : i32
    return %c0_i32, %c0_i32_0 : i32, i32
  }
  func.func @transform_9(%arg0: i32) -> (i32, i32) {
    %c0_i32 = arith.constant 0 : i32
    %c0_i32_0 = arith.constant 0 : i32
    return %arg0, %c0_i32 : i32, i32
  }
}

</mosaic_0001>

<bundles_post_ra>
// kernel: discriminator_forward.1
= control target key start
LH: loop header
LB: loop body
LE: loop exit
PB: predicated region body
PF: predicated region fallthrough
CT: control target
= control target key end

     0   :  { %14 = vsyncpa [#allocation3], 0  ;;  %s4495_s0 = inlined_call_operand.vmem [shape: bf16[16,384], index: 0, kind: input, shape index: {}]   ;;  %s4496_s1 = inlined_call_operand.hbm [shape: bf16[384,512], index: 1, kind: input, shape index: {}]   ;;  %s4497_s2 = inlined_call_operand.vmem [shape: f32[1,512], index: 2, kind: input, shape index: {}]   ;;  %s4498_s3 = inlined_call_operand.hbm [shape: bf16[512,512], index: 3, kind: input, shape index: {}]   ;;  %s4499_s4 = inlined_call_operand.vmem [shape: f32[1,512], index: 4, kind: input, shape index: {}]   ;;  %s4500_s5 = inlined_call_operand.hbm [shape: bf16[512,512], index: 5, kind: input, shape index: {}]   ;;  %s4501_s6 = inlined_call_operand.vmem [shape: f32[1,512], index: 6, kind: input, shape index: {}]   ;;  %s4502_s7 = inlined_call_operand.hbm [shape: bf16[512,128], index: 7, kind: input, shape index: {}]   ;;  %s4503_s8 = inlined_call_operand.vmem [shape: f32[1,128], index: 8, kind: input, shape index: {}]   ;;  %s4504_s9 = inlined_call_operand.vmem [shape: bf16[16,128], index: 9, kind: output, shape index: {}]  }
   0x1   :  { %15 = vsyncpa [#allocation5], 0 }
   0x2   :  { %16 = vsyncpa [#allocation8], 0  ;;  %s4348_s30 = smov [#allocation4]   ;;  %s4349_s11 = smov [#allocation2]  }
   0x3   :  { %s38_s10 = sshll.u32 %s4348_s30, 4  ;;  %s24_s12 = sshll.u32 %s4349_s11, 4  ;;  %s39_s10 = int_to_ptr.vmem [resolvable:$true] %s38_s10  ;;  %s25_s12 = int_to_ptr.vmem [resolvable:$true] %s24_s12 }
   0x4   :  { %s4270_s13 = scalar_lea.vmem %s39_s10, 16384  ;;  %p4275_p1 = scmp.lt.s32.totalorder %s39_s10, %s39_s10 }
   0x5   :  { %p4271_p0 = scmp.ne.s32.totalorder %s39_s10, %s4270_s13  ;;  %p4276_p2 = scmp.lt.s32.totalorder %s4270_s13, %s4270_s13 }
   0x7   :  { %p4277_p3 = por %p4276_p2, %p4275_p1 }
   0x9   :  { %p4278_p4 = pnand %p4277_p3, %p4271_p0 }
   0xb   :  { %4281 = shalt.err (!%p4278_p4)
}
   0xc   :  { %s4350_s14 = smov 256   ;;  %s4351_s15 = smov 16  }
   0xd   :  { %44 = dma.hbm_to_vmem [thread:$0]  %s4498_s3, 16384, %s39_s10, [#allocation5], %s4350_s14, %s4350_s14, %s4351_s15  }
   0xe   :  { %s4290_s18 = scalar_lea.vmem %s25_s12, 12288  ;;  %p4295_p6 = scmp.lt.s32.totalorder %s25_s12, %s25_s12 }
   0xf   :  { %p4291_p5 = scmp.ne.s32.totalorder %s25_s12, %s4290_s18  ;;  %p4296_p7 = scmp.lt.s32.totalorder %s4290_s18, %s4290_s18 }
  0x11   :  { %p4297_p8 = por %p4296_p7, %p4295_p6 }
  0x13   :  { %p4298_p9 = pnand %p4297_p8, %p4291_p5 }
  0x15   :  { %4301 = shalt.err (!%p4298_p9)
}
  0x16   :  { %30 = dma.hbm_to_vmem [thread:$0]  %s4496_s1, 12288, %s25_s12, [#allocation3], %s4350_s14, %s4350_s14, %s4351_s15  }
  0x17   :  { %s4352_s21 = smov [#allocation6]   ;;  %s4353_s23 = smov [#allocation7]  }
  0x18   :  { %s52_s22 = sshll.u32 %s4352_s21, 4  ;;  %s66_s24 = sshll.u32 %s4353_s23, 4  ;;  %s53_s22 = int_to_ptr.vmem [resolvable:$true] %s52_s22  ;;  %s67_s24 = int_to_ptr.vmem [resolvable:$true] %s66_s24 }
  0x19   :  { %s4310_s25 = scalar_lea.vmem %s53_s22, 16384  ;;  %p4315_p11 = scmp.lt.s32.totalorder %s53_s22, %s53_s22 }
  0x1a   :  { %p4311_p10 = scmp.ne.s32.totalorder %s53_s22, %s4310_s25  ;;  %p4316_p12 = scmp.lt.s32.totalorder %s4310_s25, %s4310_s25 }
  0x1c   :  { %p4317_p13 = por %p4316_p12, %p4315_p11 }
  0x1e   :  { %p4318_p0 = pnand %p4317_p13, %p4311_p10 }
  0x20   :  { %4321 = shalt.err (!%p4318_p0)
}
  0x21   :  { %58 = dma.hbm_to_vmem [thread:$0]  %s4500_s5, 16384, %s53_s22, [#allocation5], %s4350_s14, %s4350_s14, %s4351_s15  }
  0x22   :  { %s4330_s27 = scalar_lea.vmem %s67_s24, 4096  ;;  %p4335_p2 = scmp.lt.s32.totalorder %s67_s24, %s67_s24 }
  0x23   :  { %p4331_p1 = scmp.ne.s32.totalorder %s67_s24, %s4330_s27  ;;  %p4336_p3 = scmp.lt.s32.totalorder %s4330_s27, %s4330_s27 }
  0x25   :  { %p4337_p4 = por %p4336_p3, %p4335_p2 }
  0x27   :  { %p4338_p5 = pnand %p4337_p4, %p4331_p1 }
  0x29   :  { %4341 = shalt.err (!%p4338_p5)
}
  0x2a   :  { %s4354_s1 = smov 64   ;;  %s4355_s28 = smov 4  }
  0x2b   :  { %72 = dma.hbm_to_vmem [thread:$0]  %s4502_s7, 4096, %s67_s24, [#allocation8], %s4354_s1, %s4354_s1, %s4355_s28  }
  0x2c   :  { %4342 = dma.done.wait [#allocation3], 12288  }
  0x2d   :  { %4343 = vsyncadd [#allocation3], 4294955008 }
  0x2e   :  { %4344 = dma.done.wait [#allocation5], 32768  }
  0x2f   :  { %4345 = vsyncadd [#allocation5], 4294934528 }
  0x30   :  { %4346 = dma.done.wait [#allocation8], 4096  }
  0x31   :  { %4347 = vsyncadd [#allocation8], 4294963200  ;;  %v4356_v0 = vmov 0   ;;  %v3698_v1 = vld [vmem:[#allocation2 + $0xe4] ss:$16 sps:$4 sm:$0xff]  }
  0x32   :  { %781 = vmatprep.mubr.bf16.mxu1 %v4356_v0  ;;  %v3700_v2 = vld [vmem:[#allocation2 + $0x2e4] ss:$16 sps:$4 sm:$0xff]   ;;  %706 = vmatprep.subr.bf16.mxu0 %v3698_v1  ;;  %v3702_v3 = vld [vmem:[#allocation2 + $0xe0] ss:$16 sps:$4 sm:$0xff]   ;;  %v3751_v34 = vld [vmem:[#allocation2 + $0xec] ss:$16 sps:$4 sm:$0xff]  }
  0x33   :  { %v3703_v4 = vld [vmem:[#allocation2 + $0x2e0] ss:$16 sps:$4 sm:$0xff]   ;;  %749 = vmatprep.subr.bf16.mxu1 %v3700_v2  ;;  %v3704_v5 = vld [vmem:[#allocation2 + $0xc4] ss:$16 sps:$4 sm:$0xff]   ;;  %707 = vmatpush1.bf16.msra.mxu0 %v3702_v3  ;;  %v3749_v36 = vld [vmem:[#allocation2 + $0xe8] ss:$16 sps:$4 sm:$0xff]  }
  0x34   :  { %750 = vmatpush1.bf16.msra.mxu1 %v3703_v4  ;;  %v3706_v6 = vld [vmem:[#allocation2 + $0x2c4] ss:$16 sps:$4 sm:$0xff]   ;;  %v3708_v7 = vld [vmem:[#allocation2 + $0xc0] ss:$16 sps:$4 sm:$0xff]   ;;  %708 = vmatprep.subr.bf16.mxu0 %v3704_v5  ;;  %v3757_v39 = vld [vmem:[#allocation2 + $0xcc] ss:$16 sps:$4 sm:$0xff]  }
  0x35   :  { %v3709_v8 = vld [vmem:[#allocation2 + $0x2c0] ss:$16 sps:$4 sm:$0xff]   ;;  %751 = vmatprep.subr.bf16.mxu1 %v3706_v6  ;;  %v3710_v9 = vld [vmem:[#allocation2 + $0xa4] ss:$16 sps:$4 sm:$0xff]   ;;  %v3755_v40 = vld [vmem:[#allocation2 + $0xc8] ss:$16 sps:$4 sm:$0xff]  }
  0x36   :  { %v3712_v10 = vld [vmem:[#allocation2 + $0x2a4] ss:$16 sps:$4 sm:$0xff]   ;;  %v3714_v11 = vld [vmem:[#allocation2 + $0xa0] ss:$16 sps:$4 sm:$0xff]   ;;  %v3763_v43 = vld [vmem:[#allocation2 + $0xac] ss:$16 sps:$4 sm:$0xff]  }
  0x37   :  { %v3715_v12 = vld [vmem:[#allocation2 + $0x2a0] ss:$16 sps:$4 sm:$0xff]   ;;  %709 = vmatpush1.bf16.msra.mxu0 %v3708_v7  ;;  %v3716_v13 = vld [vmem:[#allocation2 + $0x84] ss:$16 sps:$4 sm:$0xff]   ;;  %v3761_v44 = vld [vmem:[#allocation2 + $0xa8] ss:$16 sps:$4 sm:$0xff]  }
  0x38   :  { %752 = vmatpush1.bf16.msra.mxu1 %v3709_v8  ;;  %710 = vmatprep.subr.bf16.mxu0 %v3710_v9  ;;  %v3718_v14 = vld [vmem:[#allocation2 + $0x284] ss:$16 sps:$4 sm:$0xff]   ;;  %v3720_v15 = vld [vmem:[#allocation2 + $0x80] ss:$16 sps:$4 sm:$0xff]   ;;  %v3769_v47 = vld [vmem:[#allocation2 + $0x8c] ss:$16 sps:$4 sm:$0xff]  }
  0x39   :  { %753 = vmatprep.subr.bf16.mxu1 %v3712_v10  ;;  %v3721_v16 = vld [vmem:[#allocation2 + $0x280] ss:$16 sps:$4 sm:$0xff]   ;;  %v3722_v17 = vld [vmem:[#allocation2 + $0x64] ss:$16 sps:$4 sm:$0xff]   ;;  %v3767_v48 = vld [vmem:[#allocation2 + $0x88] ss:$16 sps:$4 sm:$0xff]  }
  0x3a   :  { %v3724_v18 = vld [vmem:[#allocation2 + $0x264] ss:$16 sps:$4 sm:$0xff]   ;;  %v3726_v19 = vld [vmem:[#allocation2 + $0x60] ss:$16 sps:$4 sm:$0xff]   ;;  %v3775_v52 = vld [vmem:[#allocation2 + $0x6c] ss:$16 sps:$4 sm:$0xff]  }
  0x3b   :  { %711 = vmatpush1.bf16.msra.mxu0 %v3714_v11  ;;  %v3727_v20 = vld [vmem:[#allocation2 + $0x260] ss:$16 sps:$4 sm:$0xff]   ;;  %v3728_v21 = vld [vmem:[#allocation2 + $0x44] ss:$16 sps:$4 sm:$0xff]   ;;  %v3773_v53 = vld [vmem:[#allocation2 + $0x68] ss:$16 sps:$4 sm:$0xff]  }
  0x3c   :  { %754 = vmatpush1.bf16.msra.mxu1 %v3715_v12  ;;  %712 = vmatprep.subr.bf16.mxu0 %v3716_v13  ;;  %v3730_v22 = vld [vmem:[#allocation2 + $0x244] ss:$16 sps:$4 sm:$0xff]   ;;  %v3732_v23 = vld [vmem:[#allocation2 + $0x40] ss:$16 sps:$4 sm:$0xff]   ;;  %v3781_v56 = vld [vmem:[#allocation2 + $0x4c] ss:$16 sps:$4 sm:$0xff]  }
  0x3d   :  { %755 = vmatprep.subr.bf16.mxu1 %v3718_v14  ;;  %v3733_v24 = vld [vmem:[#allocation2 + $0x240] ss:$16 sps:$4 sm:$0xff]   ;;  %v3734_v25 = vld [vmem:[#allocation2 + $0x24] ss:$16 sps:$4 sm:$0xff]   ;;  %v3779_v57 = vld [vmem:[#allocation2 + $0x48] ss:$16 sps:$4 sm:$0xff]  }
  0x3e   :  { %v3736_v26 = vld [vmem:[#allocation2 + $0x224] ss:$16 sps:$4 sm:$0xff]   ;;  %v3738_v27 = vld [vmem:[#allocation2 + $0x20] ss:$16 sps:$4 sm:$0xff]   ;;  %v3787_v60 = vld [vmem:[#allocation2 + $0x2c] ss:$16 sps:$4 sm:$0xff]  }
  0x3f   :  { %713 = vmatpush1.bf16.msra.mxu0 %v3720_v15  ;;  %v3739_v28 = vld [vmem:[#allocation2 + $0x220] ss:$16 sps:$4 sm:$0xff]   ;;  %v3740_v29 = vld [vmem:[#allocation2 + $0x4] ss:$16 sps:$4 sm:$0xff]   ;;  %v3785_v61 = vld [vmem:[#allocation2 + $0x28] ss:$16 sps:$4 sm:$0xff]  }
  0x40   :  { %756 = vmatpush1.bf16.msra.mxu1 %v3721_v16  ;;  %714 = vmatprep.subr.bf16.mxu0 %v3722_v17  ;;  %v3742_v30 = vld [vmem:[#allocation2 + $0x204] ss:$16 sps:$4 sm:$0xff]   ;;  %v3744_v31 = vld [vmem:[#allocation2] ss:$16 sps:$4 sm:$0xff]   ;;  %v3793_v1 = vld [vmem:[#allocation2 + $0xc] ss:$16 sps:$4 sm:$0xff]  }
  0x41   :  { %757 = vmatprep.subr.bf16.mxu1 %v3724_v18  ;;  %v3745_v32 = vld [vmem:[#allocation2 + $0x200] ss:$16 sps:$4 sm:$0xff]   ;;  %v3746_v33 = vld [vmem:[#allocation2 + $0x1e4] ss:$16 sps:$4 sm:$0xff]   ;;  %v3791_v2 = vld [vmem:[#allocation2 + $0x8] ss:$16 sps:$4 sm:$0xff]  }
  0x42   :  { %v4423_v35 = vld [vmem:[%s4495_s0 + $0x8] ss:$12 sps:$4 sm:$0xff]   ;;  %v3752_v37 = vld [vmem:[#allocation2 + $0x1e0] ss:$16 sps:$4 sm:$0xff]   ;;  %v3800_v4 = vld [vmem:[#allocation2 + $0x1ec] ss:$16 sps:$4 sm:$0xff]  }
  0x43   :  { %715 = vmatpush1.bf16.msra.mxu0 %v3726_v19  ;;  %v3753_v38 = vld [vmem:[#allocation2 + $0x1c4] ss:$16 sps:$4 sm:$0xff]   ;;  %v3758_v41 = vld [vmem:[#allocation2 + $0x1c0] ss:$16 sps:$4 sm:$0xff]   ;;  %v3803_v5 = vld [vmem:[#allocation2 + $0x2ec] ss:$16 sps:$4 sm:$0xff]  }
  0x44   :  { %758 = vmatpush1.bf16.msra.mxu1 %v3727_v20  ;;  %716 = vmatprep.subr.bf16.mxu0 %v3728_v21  ;;  %v3759_v42 = vld [vmem:[#allocation2 + $0x1a4] ss:$16 sps:$4 sm:$0xff]   ;;  %v3764_v45 = vld [vmem:[#allocation2 + $0x1a0] ss:$16 sps:$4 sm:$0xff]   ;;  %v3798_v7 = vld [vmem:[#allocation2 + $0x1e8] ss:$16 sps:$4 sm:$0xff]  }
  0x45   :  { %759 = vmatprep.subr.bf16.mxu1 %v3730_v22  ;;  %v3765_v46 = vld [vmem:[#allocation2 + $0x184] ss:$16 sps:$4 sm:$0xff]   ;;  %v3770_v49 = vld [vmem:[#allocation2 + $0x180] ss:$16 sps:$4 sm:$0xff]   ;;  %v3801_v8 = vld [vmem:[#allocation2 + $0x2e8] ss:$16 sps:$4 sm:$0xff]  }
  0x46   :  { %v3771_v50 = vld [vmem:[#allocation2 + $0x164] ss:$16 sps:$4 sm:$0xff]   ;;  %v3776_v54 = vld [vmem:[#allocation2 + $0x160] ss:$16 sps:$4 sm:$0xff]   ;;  %v3806_v9 = vld [vmem:[#allocation2 + $0x1cc] ss:$16 sps:$4 sm:$0xff]  }
  0x47   :  { %717 = vmatpush1.bf16.msra.mxu0 %v3732_v23  ;;  %v3797_v51 = vld [vmem:[%s4495_s0 + $0x4] ss:$12 sps:$4 sm:$0xff]   ;;  %v4432_v6 = vld [vmem:[%s4495_s0] ss:$12 sps:$4 sm:$0xff]   ;;  %v3804_v11 = vld [vmem:[#allocation2 + $0x1c8] ss:$16 sps:$4 sm:$0xff]  }
  0x48   :  { %760 = vmatpush1.bf16.msra.mxu1 %v3733_v24  ;;  %718 = vmatprep.subr.bf16.mxu0 %v3734_v25  ;;  %v3777_v55 = vld [vmem:[#allocation2 + $0x144] ss:$16 sps:$4 sm:$0xff]   ;;  %v3782_v58 = vld [vmem:[#allocation2 + $0x140] ss:$16 sps:$4 sm:$0xff]   ;;  %v3809_v10 = vld [vmem:[#allocation2 + $0x2cc] ss:$16 sps:$4 sm:$0xff]  }
  0x49   :  { %761 = vmatprep.subr.bf16.mxu1 %v3736_v26  ;;  %738 = vmatprep.mubr.bf16.mxu0 %v3797_v51  ;;  %v3783_v59 = vld [vmem:[#allocation2 + $0x124] ss:$16 sps:$4 sm:$0xff]   ;;  %v3788_v62 = vld [vmem:[#allocation2 + $0x120] ss:$16 sps:$4 sm:$0xff]   ;;  %v3807_v12 = vld [vmem:[#allocation2 + $0x2c8] ss:$16 sps:$4 sm:$0xff]  }
  0x4a   :  { %v3789_v63 = vld [vmem:[#allocation2 + $0x104] ss:$16 sps:$4 sm:$0xff]   ;;  %v3794_v3 = vld [vmem:[#allocation2 + $0x100] ss:$16 sps:$4 sm:$0xff]   ;;  %v3812_v13 = vld [vmem:[#allocation2 + $0x1ac] ss:$16 sps:$4 sm:$0xff]  }
  0x4b   :  { %719 = vmatpush1.bf16.msra.mxu0 %v3738_v27  ;;  %v3815_v14 = vld [vmem:[#allocation2 + $0x2ac] ss:$16 sps:$4 sm:$0xff]   ;;  %v3810_v15 = vld [vmem:[#allocation2 + $0x1a8] ss:$16 sps:$4 sm:$0xff]  }
  0x4c   :  { %762 = vmatpush1.bf16.msra.mxu1 %v3739_v28  ;;  %720 = vmatprep.subr.bf16.mxu0 %v3740_v29  ;;  %v3813_v16 = vld [vmem:[#allocation2 + $0x2a8] ss:$16 sps:$4 sm:$0xff]   ;;  %v3818_v17 = vld [vmem:[#allocation2 + $0x18c] ss:$16 sps:$4 sm:$0xff]  }
  0x4d   :  { %763 = vmatprep.subr.bf16.mxu1 %v3742_v30  ;;  %v3821_v18 = vld [vmem:[#allocation2 + $0x28c] ss:$16 sps:$4 sm:$0xff]   ;;  %v3816_v19 = vld [vmem:[#allocation2 + $0x188] ss:$16 sps:$4 sm:$0xff]  }
  0x4e   :  { %v3819_v20 = vld [vmem:[#allocation2 + $0x288] ss:$16 sps:$4 sm:$0xff]   ;;  %v3824_v21 = vld [vmem:[#allocation2 + $0x16c] ss:$16 sps:$4 sm:$0xff]  }
  0x4f   :  { %721 = vmatpush1.bf16.msra.mxu0 %v3744_v31  ;;  %v3827_v22 = vld [vmem:[#allocation2 + $0x26c] ss:$16 sps:$4 sm:$0xff]   ;;  %v3822_v23 = vld [vmem:[#allocation2 + $0x168] ss:$16 sps:$4 sm:$0xff]  }
  0x50   :  { %764 = vmatpush1.bf16.msra.mxu1 %v3745_v32  ;;  %722 = vmatprep.subr.bf16.mxu0 %v3746_v33  ;;  %v3825_v24 = vld [vmem:[#allocation2 + $0x268] ss:$16 sps:$4 sm:$0xff]   ;;  %v3830_v25 = vld [vmem:[#allocation2 + $0x14c] ss:$16 sps:$4 sm:$0xff]  }
  0x51   :  { %792 = vmatprep.subr.bf16.mxu1 %v3751_v34  ;;  %v3833_v26 = vld [vmem:[#allocation2 + $0x24c] ss:$16 sps:$4 sm:$0xff]   ;;  %v3831_v27 = vld [vmem:[#allocation2 + $0x248] ss:$16 sps:$4 sm:$0xff]  }
  0x52   :  { %v3836_v28 = vld [vmem:[#allocation2 + $0x12c] ss:$16 sps:$4 sm:$0xff]   ;;  %v3834_v30 = vld [vmem:[#allocation2 + $0x128] ss:$16 sps:$4 sm:$0xff]  }
  0x53   :  { %782 = vmatmul.mubr.bf16.vlgmr.msra.gmra.mxu1 %v4423_v35  ;;  %723 = vmatpush2.bf16.msra.mxu0 %v3752_v37  ;;  %v3839_v29 = vld [vmem:[#allocation2 + $0x22c] ss:$16 sps:$4 sm:$0xff]   ;;  %v3837_v31 = vld [vmem:[#allocation2 + $0x228] ss:$16 sps:$4 sm:$0xff]   ;;  %v3848_v37 = vld [vmem:[#allocation4 + $0xe4] ss:$16 sps:$4 sm:$0xff]  }
  0x54   :  { %793 = vmatpush1.bf16.msra.mxu1 %v3749_v36  ;;  %724 = vmatprep.subr.bf16.mxu0 %v3753_v38  ;;  %v3842_v32 = vld [vmem:[#allocation2 + $0x10c] ss:$16 sps:$4 sm:$0xff]   ;;  %v3840_v34 = vld [vmem:[#allocation2 + $0x108] ss:$16 sps:$4 sm:$0xff]   ;;  %v3846_v38 = vld [vmem:[#allocation4 + $0xe0] ss:$16 sps:$4 sm:$0xff]  }
  0x55   :  { %794 = vmatprep.subr.bf16.mxu1 %v3757_v39  ;;  %824 = vmatprep.mubr.bf16.mxu1 %v3797_v51  ;;  %v3845_v33 = vld [vmem:[#allocation2 + $0x20c] ss:$16 sps:$4 sm:$0xff]   ;;  %v3843_v36 = vld [vmem:[#allocation2 + $0x208] ss:$16 sps:$4 sm:$0xff]   ;;  %v3851_v39 = vld [vmem:[#allocation4 + $0xc4] ss:$16 sps:$4 sm:$0xff]  }
  0x56   :  { %v3863_v51 = vld [vmem:[#allocation4 + $0x44] ss:$16 sps:$4 sm:$0xff]  }
  0x57   :  { %725 = vmatpush2.bf16.msra.mxu0 %v3758_v41  ;;  %v3854_v41 = vld [vmem:[#allocation4 + $0xa4] ss:$16 sps:$4 sm:$0xff]  }
  0x58   :  { %795 = vmatpush1.bf16.msra.mxu1 %v3755_v40  ;;  %726 = vmatprep.subr.bf16.mxu0 %v3759_v42  ;;  %v3849_v40 = vld [vmem:[#allocation4 + $0xc0] ss:$16 sps:$4 sm:$0xff]  }
  0x59   :  { %796 = vmatprep.subr.bf16.mxu1 %v3763_v43  ;;  %v3852_v42 = vld [vmem:[#allocation4 + $0xa0] ss:$16 sps:$4 sm:$0xff]   ;;  %v3857_v43 = vld [vmem:[#allocation4 + $0x84] ss:$16 sps:$4 sm:$0xff]  }
  0x5b   :  { %727 = vmatpush2.bf16.msra.mxu0 %v3764_v45  ;;  %v3875_v45 = vld [vmem:[#allocation4 + $0x2e4] ss:$16 sps:$4 sm:$0xff]  }
  0x5c   :  { %797 = vmatpush1.bf16.msra.mxu1 %v3761_v44  ;;  %728 = vmatprep.subr.bf16.mxu0 %v3765_v46  ;;  %v3873_v44 = vld [vmem:[#allocation4 + $0x2e0] ss:$16 sps:$4 sm:$0xff]  }
  0x5d   :  { %798 = vmatprep.subr.bf16.mxu1 %v3769_v47  ;;  %v3855_v46 = vld [vmem:[#allocation4 + $0x80] ss:$16 sps:$4 sm:$0xff]   ;;  %v3881_v47 = vld [vmem:[#allocation4 + $0x2c4] ss:$16 sps:$4 sm:$0xff]  }
  0x5f   :  { %729 = vmatpush2.bf16.msra.mxu0 %v3770_v49  ;;  %v3879_v49 = vld [vmem:[#allocation4 + $0x2c0] ss:$16 sps:$4 sm:$0xff]  }
  0x60   :  { %799 = vmatpush1.bf16.msra.mxu1 %v3767_v48  ;;  %730 = vmatprep.subr.bf16.mxu0 %v3771_v50  ;;  %v3860_v48 = vld [vmem:[#allocation4 + $0x64] ss:$16 sps:$4 sm:$0xff]   ;;  %v3858_v50 = vld [vmem:[#allocation4 + $0x60] ss:$16 sps:$4 sm:$0xff]  }
  0x61   :  { %800 = vmatprep.subr.bf16.mxu1 %v3775_v52  ;;  %v3885_v52 = vld [vmem:[#allocation4 + $0x2a0] ss:$16 sps:$4 sm:$0xff]  }
  0x63   :  { %731 = vmatpush2.bf16.msra.mxu0 %v3776_v54  ;;  %v3861_v54 = vld [vmem:[#allocation4 + $0x40] ss:$16 sps:$4 sm:$0xff]  }
  0x64   :  { %801 = vmatpush1.bf16.msra.mxu1 %v3773_v53  ;;  %732 = vmatprep.subr.bf16.mxu0 %v3777_v55  ;;  %v3893_v53 = vld [vmem:[#allocation4 + $0x284] ss:$16 sps:$4 sm:$0xff]  }
  0x65   :  { %802 = vmatprep.subr.bf16.mxu1 %v3781_v56  ;;  %v3866_v55 = vld [vmem:[#allocation4 + $0x24] ss:$16 sps:$4 sm:$0xff]   ;;  %v3891_v56 = vld [vmem:[#allocation4 + $0x280] ss:$16 sps:$4 sm:$0xff]  }
  0x67   :  { %733 = vmatpush2.bf16.msra.mxu0 %v3782_v58  ;;  %v3869_v58 = vld [vmem:[#allocation4 + $0x4] ss:$16 sps:$4 sm:$0xff]  }
  0x68   :  { %803 = vmatpush1.bf16.msra.mxu1 %v3779_v57  ;;  %734 = vmatprep.subr.bf16.mxu0 %v3783_v59  ;;  %v3864_v57 = vld [vmem:[#allocation4 + $0x20] ss:$16 sps:$4 sm:$0xff]  }
  0x69   :  { %804 = vmatprep.subr.bf16.mxu1 %v3787_v60  ;;  %v3867_v59 = vld [vmem:[#allocation4] ss:$16 sps:$4 sm:$0xff]   ;;  %v3872_v60 = vld [vmem:[#allocation4 + $0x1e4] ss:$16 sps:$4 sm:$0xff]  }
  0x6b   :  { %735 = vmatpush2.bf16.msra.mxu0 %v3788_v62  ;;  %v3878_v62 = vld [vmem:[#allocation4 + $0x1c4] ss:$16 sps:$4 sm:$0xff]  }
  0x6c   :  { %805 = vmatpush1.bf16.msra.mxu1 %v3785_v61  ;;  %736 = vmatprep.subr.bf16.mxu0 %v3789_v63  ;;  %v3870_v61 = vld [vmem:[#allocation4 + $0x1e0] ss:$16 sps:$4 sm:$0xff]   ;;  %v3899_v63 = vld [vmem:[#allocation4 + $0x264] ss:$16 sps:$4 sm:$0xff]  }
  0x6d   :  { %806 = vmatprep.subr.bf16.mxu1 %v3793_v1  ;;  %v3876_v1 = vld [vmem:[#allocation4 + $0x1c0] ss:$16 sps:$4 sm:$0xff]  }
  0x6f   :  { %737 = vmatpush2.bf16.msra.mxu0 %v3794_v3  ;;  %v3884_v3 = vld [vmem:[#allocation4 + $0x1a4] ss:$16 sps:$4 sm:$0xff]  }
  0x70   :  { %807 = vmatpush1.bf16.msra.mxu1 %v3791_v2  ;;  %835 = vmatprep.subr.bf16.mxu0 %v3803_v5  ;;  %v3897_v2 = vld [vmem:[#allocation4 + $0x260] ss:$16 sps:$4 sm:$0xff]  }
  0x71   :  { %808 = vmatprep.subr.bf16.mxu1 %v3800_v4  ;;  %v3905_v4 = vld [vmem:[#allocation4 + $0x244] ss:$16 sps:$4 sm:$0xff]   ;;  %v3882_v5 = vld [vmem:[#allocation4 + $0x1a0] ss:$16 sps:$4 sm:$0xff]  }
  0x72   :  { %739 = vmatmul.mubr.bf16.vlgmr.msra.gmra.mxu0 %v4432_v6 }
  0x73   :  { %836 = vmatpush1.bf16.msra.mxu0 %v3801_v8  ;;  %867 = vmatprep.mubr.bf16.mxu0 %v4356_v0  ;;  %v3828_v0 = vld [vmem:[#allocation2 + $0x148] ss:$16 sps:$4 sm:$0xff]   ;;  %v3888_v8 = vld [vmem:[#allocation4 + $0x180] ss:$16 sps:$4 sm:$0xff]  }
  0x74   :  { %809 = vmatpush2.bf16.msra.mxu1 %v3798_v7  ;;  %837 = vmatprep.subr.bf16.mxu0 %v3809_v10  ;;  %v3890_v7 = vld [vmem:[#allocation4 + $0x184] ss:$16 sps:$4 sm:$0xff]  }
  0x75   :  { %810 = vmatprep.subr.bf16.mxu1 %v3806_v9  ;;  %v3911_v9 = vld [vmem:[#allocation4 + $0x224] ss:$16 sps:$4 sm:$0xff]  }
  0x76   :  { %v3896_v10 = vld [vmem:[#allocation4 + $0x164] ss:$16 sps:$4 sm:$0xff]  }
  0x77   :  { %838 = vmatpush1.bf16.msra.mxu0 %v3807_v12  ;;  %v3894_v12 = vld [vmem:[#allocation4 + $0x160] ss:$16 sps:$4 sm:$0xff]  }
  0x78   :  { %811 = vmatpush2.bf16.msra.mxu1 %v3804_v11  ;;  %839 = vmatprep.subr.bf16.mxu0 %v3815_v14  ;;  %v3909_v11 = vld [vmem:[#allocation4 + $0x220] ss:$16 sps:$4 sm:$0xff]   ;;  %v3902_v14 = vld [vmem:[#allocation4 + $0x144] ss:$16 sps:$4 sm:$0xff]  }
  0x79   :  { %812 = vmatprep.subr.bf16.mxu1 %v3812_v13  ;;  %v3917_v13 = vld [vmem:[#allocation4 + $0x204] ss:$16 sps:$4 sm:$0xff]  }
  0x7b   :  { %840 = vmatpush1.bf16.msra.mxu0 %v3813_v16  ;;  %v3900_v16 = vld [vmem:[#allocation4 + $0x140] ss:$16 sps:$4 sm:$0xff]  }
  0x7c   :  { %813 = vmatpush2.bf16.msra.mxu1 %v3810_v15  ;;  %841 = vmatprep.subr.bf16.mxu0 %v3821_v18  ;;  %v3915_v15 = vld [vmem:[#allocation4 + $0x200] ss:$16 sps:$4 sm:$0xff]   ;;  %v3908_v18 = vld [vmem:[#allocation4 + $0x124] ss:$16 sps:$4 sm:$0xff]  }
  0x7d   :  { %814 = vmatprep.subr.bf16.mxu1 %v3818_v17  ;;  %v3920_v17 = vld [vmem:[#allocation4 + $0x3e4] ss:$16 sps:$4 sm:$0xff]  }
  0x7f   :  { %842 = vmatpush1.bf16.msra.mxu0 %v3819_v20  ;;  %v3906_v20 = vld [vmem:[#allocation4 + $0x120] ss:$16 sps:$4 sm:$0xff]  }
  0x80   :  { %815 = vmatpush2.bf16.msra.mxu1 %v3816_v19  ;;  %843 = vmatprep.subr.bf16.mxu0 %v3827_v22  ;;  %v3918_v19 = vld [vmem:[#allocation4 + $0x3e0] ss:$16 sps:$4 sm:$0xff]   ;;  %v3926_v22 = vld [vmem:[#allocation4 + $0x3c4] ss:$16 sps:$4 sm:$0xff]  }
  0x81   :  { %816 = vmatprep.subr.bf16.mxu1 %v3824_v21  ;;  %v3924_v21 = vld [vmem:[#allocation4 + $0x3c0] ss:$16 sps:$4 sm:$0xff]  }
  0x83   :  { %844 = vmatpush1.bf16.msra.mxu0 %v3825_v24  ;;  %v3912_v24 = vld [vmem:[#allocation4 + $0x100] ss:$16 sps:$4 sm:$0xff]  }
  0x84   :  { %817 = vmatpush2.bf16.msra.mxu1 %v3822_v23  ;;  %845 = vmatprep.subr.bf16.mxu0 %v3833_v26  ;;  %v3914_v23 = vld [vmem:[#allocation4 + $0x104] ss:$16 sps:$4 sm:$0xff]  }
  0x85   :  { %818 = vmatprep.subr.bf16.mxu1 %v3830_v25  ;;  %v3930_v25 = vld [vmem:[#allocation4 + $0x3a0] ss:$16 sps:$4 sm:$0xff]   ;;  %v3932_v26 = vld [vmem:[#allocation4 + $0x3a4] ss:$16 sps:$4 sm:$0xff]  }
  0x87   :  { %846 = vmatpush1.bf16.msra.mxu0 %v3831_v27  ;;  %v3936_v27 = vld [vmem:[#allocation4 + $0x380] ss:$16 sps:$4 sm:$0xff]  }
  0x88   :  { %819 = vmatpush2.bf16.msra.mxu1 %v3828_v0  ;;  %847 = vmatprep.subr.bf16.mxu0 %v3839_v29  ;;  %v3923_v0 = vld [vmem:[#allocation4 + $0xec] ss:$16 sps:$4 sm:$0xff]   ;;  %v3944_v29 = vld [vmem:[#allocation4 + $0x364] ss:$16 sps:$4 sm:$0xff]  }
  0x89   :  { %820 = vmatprep.subr.bf16.mxu1 %v3836_v28  ;;  %v3938_v28 = vld [vmem:[#allocation4 + $0x384] ss:$16 sps:$4 sm:$0xff]  }
  0x8b   :  { %848 = vmatpush1.bf16.msra.mxu0 %v3837_v31  ;;  %v3950_v31 = vld [vmem:[#allocation4 + $0x344] ss:$16 sps:$4 sm:$0xff]  }
  0x8c   :  { %821 = vmatpush2.bf16.msra.mxu1 %v3834_v30  ;;  %849 = vmatprep.subr.bf16.mxu0 %v3845_v33  ;;  %v3942_v30 = vld [vmem:[#allocation4 + $0x360] ss:$16 sps:$4 sm:$0xff]   ;;  %v3956_v33 = vld [vmem:[#allocation4 + $0x324] ss:$16 sps:$4 sm:$0xff]  }
  0x8d   :  { %822 = vmatprep.subr.bf16.mxu1 %v3842_v32  ;;  %v3948_v32 = vld [vmem:[#allocation4 + $0x340] ss:$16 sps:$4 sm:$0xff]  }
  0x8f   :  { %850 = vmatpush1.bf16.msra.mxu0 %v3843_v36  ;;  %v3960_v36 = vld [vmem:[#allocation4 + $0x300] ss:$16 sps:$4 sm:$0xff]  }
  0x90   :  { %823 = vmatpush2.bf16.msra.mxu1 %v3840_v34  ;;  %1696 = vmatprep.subr.bf16.mxu0 %v3848_v37  ;;  %v3954_v34 = vld [vmem:[#allocation4 + $0x320] ss:$16 sps:$4 sm:$0xff]   ;;  %v3962_v37 = vld [vmem:[#allocation4 + $0x304] ss:$16 sps:$4 sm:$0xff]  }
  0x91   :  { %1739 = vmatprep.subr.bf16.mxu1 %v3875_v45 }
  0x92   :  { %868 = vmatmul.mubr.bf16.vlgmr.msra.gmra.mxu0 %v4423_v35  ;;  %v3887_v35 = vld [vmem:[#allocation4 + $0x2a4] ss:$16 sps:$4 sm:$0xff]  }
  0x93   :  { %825 = vmatmul.mubr.bf16.vlgmr.msra.gmra.mxu1 %v4432_v6  ;;  %1697 = vmatpush1.bf16.msra.mxu0 %v3846_v38  ;;  %v3903_v6 = vld [vmem:[#allocation4 + $0x240] ss:$16 sps:$4 sm:$0xff]   ;;  %v3971_v38 = vld [vmem:[#allocation4 + $0x2ec] ss:$16 sps:$4 sm:$0xff]  }
  0x94   :  { %1698 = vmatprep.subr.bf16.mxu0 %v3851_v39  ;;  %1740 = vmatpush1.bf16.msra.mxu1 %v3873_v44  ;;  %v190_v39 = vlaneseq }
  0x95   :  { %1741 = vmatprep.subr.bf16.mxu1 %v3881_v47 }
  0x97   :  { %1699 = vmatpush1.bf16.msra.mxu0 %v3849_v40  ;;  %v191_v40 = vshrl.u32 %v190_v39, 7  ;;  %v3965_v39 = vld [vmem:[#allocation4 + $0xc] ss:$16 sps:$4 sm:$0xff]  }
  0x98   :  { %1700 = vmatprep.subr.bf16.mxu0 %v3854_v41  ;;  %1742 = vmatpush1.bf16.msra.mxu1 %v3879_v49 }
  0x99   :  { %1743 = vmatprep.subr.bf16.mxu1 %v3887_v35  ;;  %v4438_v41 = vsub.s32 0, %v191_v40 }
  0x9b   :  { %1701 = vmatpush1.bf16.msra.mxu0 %v3852_v42  ;;  %v4440_v42 = vsub.s32 1, %v191_v40 }
  0x9c   :  { %1702 = vmatprep.subr.bf16.mxu0 %v3857_v43  ;;  %1744 = vmatpush1.bf16.msra.mxu1 %v3885_v52  ;;  %v188_v43 = vld [vmem:[%s4497_s2] sm:$0xf] }
  0x9d   :  { %1745 = vmatprep.subr.bf16.mxu1 %v3893_v53  ;;  %v193_v45 = vrot.slane %v188_v43, %v4438_v41 }
  0x9f   :  { %1703 = vmatpush1.bf16.msra.mxu0 %v3855_v46  ;;  %v197_v46 = vrot.slane %v188_v43, %v4440_v42 }
  0xa0   :  { %1704 = vmatprep.subr.bf16.mxu0 %v3860_v48  ;;  %1746 = vmatpush1.bf16.msra.mxu1 %v3891_v56 }
  0xa1   :  { %1747 = vmatprep.subr.bf16.mxu1 %v3899_v63 }
  0xa3   :  { %1705 = vmatpush1.bf16.msra.mxu0 %v3858_v50 }
  0xa4   :  { %1706 = vmatprep.subr.bf16.mxu0 %v3863_v51  ;;  %1748 = vmatpush1.bf16.msra.mxu1 %v3897_v2 }
  0xa5   :  { %1749 = vmatprep.subr.bf16.mxu1 %v3905_v4 }
  0xa7   :  { %1707 = vmatpush1.bf16.msra.mxu0 %v3861_v54 }
  0xa8   :  { %1708 = vmatprep.subr.bf16.mxu0 %v3866_v55  ;;  %1750 = vmatpush1.bf16.msra.mxu1 %v3903_v6 }
  0xa9   :  { %1751 = vmatprep.subr.bf16.mxu1 %v3911_v9  ;;  %v3929_v9 = vld [vmem:[#allocation4 + $0xcc] ss:$16 sps:$4 sm:$0xff]  }
  0xab   :  { %1709 = vmatpush1.bf16.msra.mxu0 %v3864_v57 }
  0xac   :  { %1710 = vmatprep.subr.bf16.mxu0 %v3869_v58  ;;  %1752 = vmatpush1.bf16.msra.mxu1 %v3909_v11  ;;  %v3935_v11 = vld [vmem:[#allocation4 + $0xac] ss:$16 sps:$4 sm:$0xff]  }
  0xad   :  { %1753 = vmatprep.subr.bf16.mxu1 %v3917_v13  ;;  %v3941_v13 = vld [vmem:[#allocation4 + $0x8c] ss:$16 sps:$4 sm:$0xff]  }
  0xaf   :  { %1711 = vmatpush1.bf16.msra.mxu0 %v3867_v59 }
  0xb0   :  { %1712 = vmatprep.subr.bf16.mxu0 %v3872_v60  ;;  %1754 = vmatpush1.bf16.msra.mxu1 %v3915_v15  ;;  %v4450_v15 = vsub.s32 2, %v191_v40 }
  0xb1   :  { %1755 = vmatprep.subr.bf16.mxu1 %v3920_v17  ;;  %v3947_v17 = vld [vmem:[#allocation4 + $0x6c] ss:$16 sps:$4 sm:$0xff]  }
  0xb3   :  { %1713 = vmatpush2.bf16.msra.mxu0 %v3870_v61 }
  0xb4   :  { %1714 = vmatprep.subr.bf16.mxu0 %v3878_v62  ;;  %1756 = vmatpush2.bf16.msra.mxu1 %v3918_v19  ;;  %v3945_v19 = vld [vmem:[#allocation4 + $0x68] ss:$16 sps:$4 sm:$0xff]  }
  0xb5   :  { %1757 = vmatprep.subr.bf16.mxu1 %v3926_v22 }
  0xb7   :  { %1715 = vmatpush2.bf16.msra.mxu0 %v3876_v1 }
  0xb8   :  { %1716 = vmatprep.subr.bf16.mxu0 %v3884_v3  ;;  %1758 = vmatpush2.bf16.msra.mxu1 %v3924_v21 }
  0xb9   :  { %1759 = vmatprep.subr.bf16.mxu1 %v3932_v26 }
  0xbb   :  { %1717 = vmatpush2.bf16.msra.mxu0 %v3882_v5 }
  0xbc   :  { %1718 = vmatprep.subr.bf16.mxu0 %v3890_v7  ;;  %1760 = vmatpush2.bf16.msra.mxu1 %v3930_v25  ;;  %v3921_v7 = vld [vmem:[#allocation4 + $0xe8] ss:$16 sps:$4 sm:$0xff]  }
  0xbd   :  { %1761 = vmatprep.subr.bf16.mxu1 %v3938_v28 }
  0xbf   :  { %1719 = vmatpush2.bf16.msra.mxu0 %v3888_v8 }
  0xc0   :  { %1720 = vmatprep.subr.bf16.mxu0 %v3896_v10  ;;  %1762 = vmatpush2.bf16.msra.mxu1 %v3936_v27  ;;  %v3927_v10 = vld [vmem:[#allocation4 + $0xc8] ss:$16 sps:$4 sm:$0xff]  }
  0xc1   :  { %1763 = vmatprep.subr.bf16.mxu1 %v3944_v29  ;;  %v3951_v27 = vld [vmem:[#allocation4 + $0x48] ss:$16 sps:$4 sm:$0xff]   ;;  %v3959_v29 = vld [vmem:[#allocation4 + $0x2c] ss:$16 sps:$4 sm:$0xff]  }
  0xc3   :  { %1721 = vmatpush2.bf16.msra.mxu0 %v3894_v12  ;;  %v3933_v12 = vld [vmem:[#allocation4 + $0xa8] ss:$16 sps:$4 sm:$0xff]  }
  0xc4   :  { %1722 = vmatprep.subr.bf16.mxu0 %v3902_v14  ;;  %1764 = vmatpush2.bf16.msra.mxu1 %v3942_v30  ;;  %v3939_v14 = vld [vmem:[#allocation4 + $0x88] ss:$16 sps:$4 sm:$0xff]  }
  0xc5   :  { %1765 = vmatprep.subr.bf16.mxu1 %v3950_v31 }
  0xc7   :  { %1723 = vmatpush2.bf16.msra.mxu0 %v3900_v16  ;;  %v4452_v16 = vsub.s32 3, %v191_v40 }
  0xc8   :  { %1724 = vmatprep.subr.bf16.mxu0 %v3908_v18  ;;  %1766 = vmatpush2.bf16.msra.mxu1 %v3948_v32  ;;  %v201_v18 = vrot.slane %v188_v43, %v4450_v15 }
  0xc9   :  { %1767 = vmatprep.subr.bf16.mxu1 %v3956_v33 }
  0xcb   :  { %1725 = vmatpush2.bf16.msra.mxu0 %v3906_v20  ;;  %v205_v20 = vrot.slane %v188_v43, %v4452_v16 }
  0xcc   :  { %1726 = vmatprep.subr.bf16.mxu0 %v3914_v23  ;;  %1768 = vmatpush2.bf16.msra.mxu1 %v3954_v34  ;;  %v3953_v23 = vld [vmem:[#allocation4 + $0x4c] ss:$16 sps:$4 sm:$0xff]  }
  0xcd   :  { %1769 = vmatprep.subr.bf16.mxu1 %v3962_v37  ;;  %v3957_v37 = vld [vmem:[#allocation4 + $0x28] ss:$16 sps:$4 sm:$0xff]  }
  0xcf   :  { %1727 = vmatpush2.bf16.msra.mxu0 %v3912_v24 }
  0xd0   :  { %1782 = vmatprep.subr.bf16.mxu0 %v3923_v0  ;;  %1770 = vmatpush2.bf16.msra.mxu1 %v3960_v36 }
  0xd1   :  { %1825 = vmatprep.subr.bf16.mxu1 %v3971_v38 }
 0x113   :  { %v783_v44 = vpop.f32.mrf.mxu1 }
 0x115   :  { %v785_v48 = vpop.f32.mrf.mxu1 }
 0x117   :  { %v787_v52 = vpop.f32.mrf.mxu1 }
 0x119   :  { %v789_v59 = vpop.f32.mrf.mxu1 }
 0x132   :  { %v740_v47 = vpop.f32.mrf.mxu0 }
 0x133   :  { %v741_v50 = vadd.f32 %v740_v47, %v193_v45  ;;  %v3963_v47 = vld [vmem:[#allocation4 + $0x8] ss:$16 sps:$4 sm:$0xff]  }
 0x134   :  { %v742_v49 = vpop.f32.mrf.mxu0 }
 0x135   :  { %v743_v51 = vadd.f32 %v742_v49, %v197_v46  ;;  %v784_v56 = vadd.f32 %v783_v44, %v741_v50  ;;  %v3968_v49 = vld [vmem:[#allocation4 + $0x1ec] ss:$16 sps:$4 sm:$0xff]  }
 0x136   :  { %v744_v35 = vpop.f32.mrf.mxu0 }
 0x137   :  { %v745_v53 = vadd.f32 %v744_v35, %v193_v45  ;;  %v786_v54 = vadd.f32 %v785_v48, %v743_v51  ;;  %v886_v63 = vmul.f32 0.2, %v784_v56  ;;  %vm878_vm2 = vcmp.gt.f32.partialorder %v784_v56, 0.0 }
 0x138   :  { %v746_v55 = vpop.f32.mrf.mxu0 }
 0x139   :  { %v788_v57 = vadd.f32 %v787_v52, %v745_v53  ;;  %v747_v58 = vadd.f32 %v746_v55, %v197_v46  ;;  %v887_v61 = vmul.f32 0.2, %v786_v54  ;;  %vm879_vm1 = vcmp.gt.f32.partialorder %v786_v54, 0.0  ;;  %v3969_v55 = vld [vmem:[#allocation4 + $0x2e8] ss:$16 sps:$4 sm:$0xff]  }
 0x13a   :  { %v894_v5 = vsel %vm878_vm2, %v784_v56, %v886_v63  ;;  %v3978_v63 = vld [vmem:[#allocation4 + $0x1a8] ss:$16 sps:$4 sm:$0xff]  }
 0x13b   :  { %v890_v60 = vmul.f32 0.2, %v788_v57  ;;  %vm882_vm0 = vcmp.gt.f32.partialorder %v788_v57, 0.0  ;;  %v790_v62 = vadd.f32 %v789_v59, %v747_v58  ;;  %v895_v3 = vsel %vm879_vm1, %v786_v54, %v887_v61  ;;  %v3966_v54 = vld [vmem:[#allocation4 + $0x1e8] ss:$16 sps:$4 sm:$0xff]  }
 0x13c   :  { %v3977_v58 = vld [vmem:[#allocation4 + $0x2cc] ss:$16 sps:$4 sm:$0xff]   ;;  %v3972_v59 = vld [vmem:[#allocation4 + $0x1c8] ss:$16 sps:$4 sm:$0xff]  }
 0x13d   :  { %vm883_vm3 = vcmp.gt.f32.partialorder %v790_v62, 0.0  ;;  %v891_v1 = vmul.f32 0.2, %v790_v62  ;;  %v898_v2 = vsel %vm882_vm0, %v788_v57, %v890_v60  ;;  %v3974_v57 = vld [vmem:[#allocation4 + $0x1cc] ss:$16 sps:$4 sm:$0xff]  }
 0x13e   :  { %v4447_v8 = vpack.c.bf16 %v898_v2, %v894_v5  ;;  %v3975_v60 = vld [vmem:[#allocation4 + $0x2c8] ss:$16 sps:$4 sm:$0xff]   ;;  %v3980_v61 = vld [vmem:[#allocation4 + $0x1ac] ss:$16 sps:$4 sm:$0xff]  }
 0x13f   :  { %v899_v4 = vsel %vm883_vm3, %v790_v62, %v891_v1  ;;  %v3983_v62 = vld [vmem:[#allocation4 + $0x2ac] ss:$16 sps:$4 sm:$0xff]   ;;  %v3981_v1 = vld [vmem:[#allocation4 + $0x2a8] ss:$16 sps:$4 sm:$0xff]  }
 0x140   :  { %v903_v6 = vpack.c.bf16 %v899_v4, %v895_v3  ;;  %v3986_v2 = vld [vmem:[#allocation4 + $0x18c] ss:$16 sps:$4 sm:$0xff]   ;;  %v3984_v4 = vld [vmem:[#allocation4 + $0x188] ss:$16 sps:$4 sm:$0xff]  }
 0x141   :  { %v3989_v3 = vld [vmem:[#allocation4 + $0x28c] ss:$16 sps:$4 sm:$0xff]   ;;  %v3987_v5 = vld [vmem:[#allocation4 + $0x288] ss:$16 sps:$4 sm:$0xff]  }
 0x142   :  { %1728 = vmatprep.mubr.bf16.mxu0 %v903_v6 }
 0x143   :  { %1729 = vmatmul.mubr.bf16.vlgmr.msra.gmra.mxu0 %v4447_v8 }
 0x144   :  { %1783 = vmatpush1.bf16.msra.mxu0 %v3921_v7  ;;  %1814 = vmatprep.mubr.bf16.mxu0 %v903_v6  ;;  %v3992_v6 = vld [vmem:[#allocation4 + $0x16c] ss:$16 sps:$4 sm:$0xff]  }
 0x145   :  { %1784 = vmatprep.subr.bf16.mxu0 %v3929_v9  ;;  %v3995_v7 = vld [vmem:[#allocation4 + $0x26c] ss:$16 sps:$4 sm:$0xff]   ;;  %v3990_v9 = vld [vmem:[#allocation4 + $0x168] ss:$16 sps:$4 sm:$0xff]  }
 0x148   :  { %1785 = vmatpush1.bf16.msra.mxu0 %v3927_v10  ;;  %v3993_v10 = vld [vmem:[#allocation4 + $0x268] ss:$16 sps:$4 sm:$0xff]  }
 0x149   :  { %1786 = vmatprep.subr.bf16.mxu0 %v3935_v11  ;;  %v3998_v11 = vld [vmem:[#allocation4 + $0x14c] ss:$16 sps:$4 sm:$0xff]  }
 0x14c   :  { %1787 = vmatpush1.bf16.msra.mxu0 %v3933_v12  ;;  %v4001_v12 = vld [vmem:[#allocation4 + $0x24c] ss:$16 sps:$4 sm:$0xff]  }
 0x14d   :  { %1788 = vmatprep.subr.bf16.mxu0 %v3941_v13  ;;  %v3996_v13 = vld [vmem:[#allocation4 + $0x148] ss:$16 sps:$4 sm:$0xff]  }
 0x150   :  { %1789 = vmatpush1.bf16.msra.mxu0 %v3939_v14  ;;  %v3999_v14 = vld [vmem:[#allocation4 + $0x248] ss:$16 sps:$4 sm:$0xff]  }
 0x151   :  { %1790 = vmatprep.subr.bf16.mxu0 %v3947_v17  ;;  %v4004_v17 = vld [vmem:[#allocation4 + $0x12c] ss:$16 sps:$4 sm:$0xff]  }
 0x152   :  { %v869_v22 = vpop.f32.mrf.mxu0 }
 0x153   :  { %v826_v21 = vpop.f32.mrf.mxu1 }
 0x154   :  { %v871_v25 = vpop.f32.mrf.mxu0  ;;  %v827_v26 = vadd.f32 %v826_v21, %v201_v18  ;;  %1791 = vmatpush1.bf16.msra.mxu0 %v3945_v19  ;;  %v4002_v19 = vld [vmem:[#allocation4 + $0x128] ss:$16 sps:$4 sm:$0xff]   ;;  %v4010_v21 = vld [vmem:[#allocation4 + $0x10c] ss:$16 sps:$4 sm:$0xff]  }
 0x155   :  { %v828_v24 = vpop.f32.mrf.mxu1  ;;  %1792 = vmatprep.subr.bf16.mxu0 %v3953_v23  ;;  %v4008_v23 = vld [vmem:[#allocation4 + $0x108] ss:$16 sps:$4 sm:$0xff]  }
 0x156   :  { %v829_v0 = vadd.f32 %v828_v24, %v205_v20  ;;  %v873_v31 = vpop.f32.mrf.mxu0  ;;  %v870_v34 = vadd.f32 %v869_v22, %v827_v26  ;;  %v4013_v22 = vld [vmem:[#allocation4 + $0x20c] ss:$16 sps:$4 sm:$0xff]   ;;  %v4011_v24 = vld [vmem:[#allocation4 + $0x208] ss:$16 sps:$4 sm:$0xff]   ;;  %v4040_v26 = vld [vmem:[#allocation6 + $0xe4] ss:$16 sps:$4 sm:$0xff]  }
 0x157   :  { %v830_v28 = vpop.f32.mrf.mxu1 }
 0x158   :  { %v831_v30 = vadd.f32 %v830_v28, %v201_v18  ;;  %v872_v32 = vadd.f32 %v871_v25, %v829_v0  ;;  %1793 = vmatpush1.bf16.msra.mxu0 %v3951_v27  ;;  %v875_v43 = vpop.f32.mrf.mxu0  ;;  %v888_v46 = vmul.f32 0.2, %v870_v34  ;;  %vm880_vm6 = vcmp.gt.f32.partialorder %v870_v34, 0.0  ;;  %v4007_v18 = vld [vmem:[#allocation4 + $0x22c] ss:$16 sps:$4 sm:$0xff]  }
 0x159   :  { %v832_v33 = vpop.f32.mrf.mxu1  ;;  %1794 = vmatprep.subr.bf16.mxu0 %v3959_v29  ;;  %v4016_v25 = vld [vmem:[#allocation4 + $0x3ec] ss:$16 sps:$4 sm:$0xff]   ;;  %v4014_v0 = vld [vmem:[#allocation4 + $0x3e8] ss:$16 sps:$4 sm:$0xff]   ;;  %v4038_v27 = vld [vmem:[#allocation6 + $0xe0] ss:$16 sps:$4 sm:$0xff]  }
 0x15a   :  { %v874_v36 = vadd.f32 %v873_v31, %v831_v30  ;;  %v833_v38 = vadd.f32 %v832_v33, %v205_v20  ;;  %v889_v44 = vmul.f32 0.2, %v872_v32  ;;  %vm881_vm5 = vcmp.gt.f32.partialorder %v872_v32, 0.0  ;;  %v4005_v20 = vld [vmem:[#allocation4 + $0x228] ss:$16 sps:$4 sm:$0xff]  }
 0x15b   :  { %v896_v52 = vsel %vm880_vm6, %v870_v34, %v888_v46  ;;  %v4019_v28 = vld [vmem:[#allocation4 + $0x3cc] ss:$16 sps:$4 sm:$0xff]   ;;  %v4043_v29 = vld [vmem:[#allocation6 + $0xc4] ss:$16 sps:$4 sm:$0xff]   ;;  %v4017_v30 = vld [vmem:[#allocation4 + $0x3c8] ss:$16 sps:$4 sm:$0xff]  }
 0x15c   :  { %v892_v40 = vmul.f32 0.2, %v874_v36  ;;  %vm884_vm4 = vcmp.gt.f32.partialorder %v874_v36, 0.0  ;;  %v876_v45 = vadd.f32 %v875_v43, %v833_v38  ;;  %1795 = vmatpush1.bf16.msra.mxu0 %v3957_v37  ;;  %v897_v51 = vsel %vm881_vm5, %v872_v32, %v889_v44  ;;  %v4041_v31 = vld [vmem:[#allocation6 + $0xc0] ss:$16 sps:$4 sm:$0xff]  }
 0x15d   :  { %1796 = vmatprep.subr.bf16.mxu0 %v3965_v39  ;;  %v4022_v32 = vld [vmem:[#allocation4 + $0x3ac] ss:$16 sps:$4 sm:$0xff]   ;;  %v4046_v33 = vld [vmem:[#allocation6 + $0xa4] ss:$16 sps:$4 sm:$0xff]   ;;  %v4020_v34 = vld [vmem:[#allocation4 + $0x3a8] ss:$16 sps:$4 sm:$0xff]  }
 0x15e   :  { %vm885_vm7 = vcmp.gt.f32.partialorder %v876_v45, 0.0  ;;  %v893_v48 = vmul.f32 0.2, %v876_v45  ;;  %v900_v50 = vsel %vm884_vm4, %v874_v36, %v892_v40  ;;  %v4044_v36 = vld [vmem:[#allocation6 + $0xa0] ss:$16 sps:$4 sm:$0xff]  }
 0x15f   :  { %v4456_v56 = vpack.c.bf16 %v900_v50, %v896_v52  ;;  %v4025_v37 = vld [vmem:[#allocation4 + $0x38c] ss:$16 sps:$4 sm:$0xff]   ;;  %v4049_v38 = vld [vmem:[#allocation6 + $0x84] ss:$16 sps:$4 sm:$0xff]   ;;  %v4023_v39 = vld [vmem:[#allocation4 + $0x388] ss:$16 sps:$4 sm:$0xff]  }
 0x160   :  { %v901_v35 = vsel %vm885_vm7, %v876_v45, %v893_v48  ;;  %1797 = vmatpush1.bf16.msra.mxu0 %v3963_v47  ;;  %v4028_v40 = vld [vmem:[#allocation4 + $0x36c] ss:$16 sps:$4 sm:$0xff]   ;;  %v4052_v43 = vld [vmem:[#allocation6 + $0x64] ss:$16 sps:$4 sm:$0xff]   ;;  %v4026_v44 = vld [vmem:[#allocation4 + $0x368] ss:$16 sps:$4 sm:$0xff]  }
 0x161   :  { %v905_v53 = vpack.c.bf16 %v901_v35, %v897_v51  ;;  %1798 = vmatprep.subr.bf16.mxu0 %v3968_v49  ;;  %v4050_v45 = vld [vmem:[#allocation6 + $0x60] ss:$16 sps:$4 sm:$0xff]   ;;  %v4031_v46 = vld [vmem:[#allocation4 + $0x34c] ss:$16 sps:$4 sm:$0xff]   ;;  %v4055_v47 = vld [vmem:[#allocation6 + $0x44] ss:$16 sps:$4 sm:$0xff]  }
 0x162   :  { %v4029_v48 = vld [vmem:[#allocation4 + $0x348] ss:$16 sps:$4 sm:$0xff]   ;;  %v4053_v49 = vld [vmem:[#allocation6 + $0x40] ss:$16 sps:$4 sm:$0xff]   ;;  %v4034_v50 = vld [vmem:[#allocation4 + $0x32c] ss:$16 sps:$4 sm:$0xff]  }
 0x163   :  { %1771 = vmatprep.mubr.bf16.mxu1 %v905_v53  ;;  %v4058_v51 = vld [vmem:[#allocation6 + $0x24] ss:$16 sps:$4 sm:$0xff]   ;;  %v4032_v35 = vld [vmem:[#allocation4 + $0x328] ss:$16 sps:$4 sm:$0xff]   ;;  %v4056_v52 = vld [vmem:[#allocation6 + $0x20] ss:$16 sps:$4 sm:$0xff]  }
 0x164   :  { %1772 = vmatmul.mubr.bf16.vlgmr.msra.gmra.mxu1 %v4456_v56  ;;  %1799 = vmatpush2.bf16.msra.mxu0 %v3966_v54  ;;  %v4061_v54 = vld [vmem:[#allocation6 + $0x4] ss:$16 sps:$4 sm:$0xff]  }
 0x165   :  { %1826 = vmatpush1.bf16.msra.mxu1 %v3969_v55  ;;  %1857 = vmatprep.mubr.bf16.mxu1 %v905_v53  ;;  %v4037_v53 = vld [vmem:[#allocation4 + $0x30c] ss:$16 sps:$4 sm:$0xff]   ;;  %v4035_v55 = vld [vmem:[#allocation4 + $0x308] ss:$16 sps:$4 sm:$0xff]  }
 0x166   :  { %1800 = vmatprep.subr.bf16.mxu0 %v3974_v57  ;;  %1827 = vmatprep.subr.bf16.mxu1 %v3977_v58  ;;  %v4059_v57 = vld [vmem:[#allocation6] ss:$16 sps:$4 sm:$0xff]   ;;  %v4064_v58 = vld [vmem:[#allocation6 + $0x1e4] ss:$16 sps:$4 sm:$0xff]  }
 0x168   :  { %1801 = vmatpush2.bf16.msra.mxu0 %v3972_v59  ;;  %v4062_v59 = vld [vmem:[#allocation6 + $0x1e0] ss:$16 sps:$4 sm:$0xff]  }
 0x169   :  { %1828 = vmatpush1.bf16.msra.mxu1 %v3975_v60  ;;  %1802 = vmatprep.subr.bf16.mxu0 %v3980_v61  ;;  %v4067_v60 = vld [vmem:[#allocation6 + $0x1c4] ss:$16 sps:$4 sm:$0xff]   ;;  %v4065_v61 = vld [vmem:[#allocation6 + $0x1c0] ss:$16 sps:$4 sm:$0xff]  }
 0x16a   :  { %1829 = vmatprep.subr.bf16.mxu1 %v3983_v62  ;;  %v4070_v62 = vld [vmem:[#allocation6 + $0x1a4] ss:$16 sps:$4 sm:$0xff]  }
 0x16c   :  { %1803 = vmatpush2.bf16.msra.mxu0 %v3978_v63  ;;  %v4068_v63 = vld [vmem:[#allocation6 + $0x1a0] ss:$16 sps:$4 sm:$0xff]  }
 0x16d   :  { %1830 = vmatpush1.bf16.msra.mxu1 %v3981_v1  ;;  %1804 = vmatprep.subr.bf16.mxu0 %v3986_v2  ;;  %v4073_v1 = vld [vmem:[#allocation6 + $0x184] ss:$16 sps:$4 sm:$0xff]   ;;  %v4071_v2 = vld [vmem:[#allocation6 + $0x180] ss:$16 sps:$4 sm:$0xff]  }
 0x16e   :  { %1831 = vmatprep.subr.bf16.mxu1 %v3989_v3  ;;  %v4076_v3 = vld [vmem:[#allocation6 + $0x164] ss:$16 sps:$4 sm:$0xff]  }
 0x170   :  { %1805 = vmatpush2.bf16.msra.mxu0 %v3984_v4  ;;  %v4086_v4 = vld [vmem:[#allocation6 + $0x2e0] ss:$16 sps:$4 sm:$0xff]  }
 0x171   :  { %1832 = vmatpush1.bf16.msra.mxu1 %v3987_v5  ;;  %1806 = vmatprep.subr.bf16.mxu0 %v3992_v6  ;;  %v4088_v5 = vld [vmem:[#allocation6 + $0x2e4] ss:$16 sps:$4 sm:$0xff]   ;;  %v4074_v6 = vld [vmem:[#allocation6 + $0x160] ss:$16 sps:$4 sm:$0xff]  }
 0x172   :  { %1833 = vmatprep.subr.bf16.mxu1 %v3995_v7  ;;  %v4092_v7 = vld [vmem:[#allocation6 + $0x2c0] ss:$16 sps:$4 sm:$0xff]  }
 0x174   :  { %1807 = vmatpush2.bf16.msra.mxu0 %v3990_v9  ;;  %v4094_v9 = vld [vmem:[#allocation6 + $0x2c4] ss:$16 sps:$4 sm:$0xff]  }
 0x175   :  { %1834 = vmatpush1.bf16.msra.mxu1 %v3993_v10  ;;  %1808 = vmatprep.subr.bf16.mxu0 %v3998_v11  ;;  %v4077_v10 = vld [vmem:[#allocation6 + $0x140] ss:$16 sps:$4 sm:$0xff]   ;;  %v4082_v11 = vld [vmem:[#allocation6 + $0x124] ss:$16 sps:$4 sm:$0xff]  }
 0x176   :  { %1835 = vmatprep.subr.bf16.mxu1 %v4001_v12  ;;  %v4098_v12 = vld [vmem:[#allocation6 + $0x2a0] ss:$16 sps:$4 sm:$0xff]  }
 0x178   :  { %1809 = vmatpush2.bf16.msra.mxu0 %v3996_v13  ;;  %v4100_v13 = vld [vmem:[#allocation6 + $0x2a4] ss:$16 sps:$4 sm:$0xff]  }
 0x179   :  { %1836 = vmatpush1.bf16.msra.mxu1 %v3999_v14  ;;  %1810 = vmatprep.subr.bf16.mxu0 %v4004_v17  ;;  %v4080_v14 = vld [vmem:[#allocation6 + $0x120] ss:$16 sps:$4 sm:$0xff]   ;;  %v4085_v17 = vld [vmem:[#allocation6 + $0x104] ss:$16 sps:$4 sm:$0xff]  }
 0x17a   :  { %1837 = vmatprep.subr.bf16.mxu1 %v4007_v18  ;;  %v4104_v18 = vld [vmem:[#allocation6 + $0x280] ss:$16 sps:$4 sm:$0xff]  }
 0x17c   :  { %1811 = vmatpush2.bf16.msra.mxu0 %v4002_v19  ;;  %v4106_v19 = vld [vmem:[#allocation6 + $0x284] ss:$16 sps:$4 sm:$0xff]  }
 0x17d   :  { %1838 = vmatpush1.bf16.msra.mxu1 %v4005_v20  ;;  %1812 = vmatprep.subr.bf16.mxu0 %v4010_v21  ;;  %v4083_v20 = vld [vmem:[#allocation6 + $0x100] ss:$16 sps:$4 sm:$0xff]   ;;  %v4091_v21 = vld [vmem:[#allocation6 + $0xec] ss:$16 sps:$4 sm:$0xff]  }
 0x17e   :  { %1839 = vmatprep.subr.bf16.mxu1 %v4013_v22  ;;  %v4110_v22 = vld [vmem:[#allocation6 + $0x260] ss:$16 sps:$4 sm:$0xff]  }
 0x180   :  { %1813 = vmatpush2.bf16.msra.mxu0 %v4008_v23  ;;  %v4112_v23 = vld [vmem:[#allocation6 + $0x264] ss:$16 sps:$4 sm:$0xff]  }
 0x181   :  { %1840 = vmatpush1.bf16.msra.mxu1 %v4011_v24  ;;  %2686 = vmatprep.subr.bf16.mxu0 %v4040_v26  ;;  %v4118_v24 = vld [vmem:[#allocation6 + $0x244] ss:$16 sps:$4 sm:$0xff]  }
 0x182   :  { %1841 = vmatprep.subr.bf16.mxu1 %v4016_v25  ;;  %v4116_v25 = vld [vmem:[#allocation6 + $0x240] ss:$16 sps:$4 sm:$0xff]   ;;  %v4124_v26 = vld [vmem:[#allocation6 + $0x224] ss:$16 sps:$4 sm:$0xff]  }
 0x183   :  { %1815 = vmatmul.mubr.bf16.vlgmr.msra.gmra.mxu0 %v4447_v8  ;;  %v4047_v8 = vld [vmem:[#allocation6 + $0x80] ss:$16 sps:$4 sm:$0xff]  }
 0x184   :  { %2687 = vmatpush1.bf16.msra.mxu0 %v4038_v27  ;;  %v4128_v27 = vld [vmem:[#allocation6 + $0x200] ss:$16 sps:$4 sm:$0xff]  }
 0x185   :  { %1842 = vmatpush2.bf16.msra.mxu1 %v4014_v0  ;;  %2688 = vmatprep.subr.bf16.mxu0 %v4043_v29  ;;  %v4122_v0 = vld [vmem:[#allocation6 + $0x220] ss:$16 sps:$4 sm:$0xff]  }
 0x186   :  { %1843 = vmatprep.subr.bf16.mxu1 %v4019_v28  ;;  %v4130_v28 = vld [vmem:[#allocation6 + $0x204] ss:$16 sps:$4 sm:$0xff]   ;;  %v4134_v29 = vld [vmem:[#allocation6 + $0x3e0] ss:$16 sps:$4 sm:$0xff]  }
 0x188   :  { %2689 = vmatpush1.bf16.msra.mxu0 %v4041_v31  ;;  %v4140_v31 = vld [vmem:[#allocation6 + $0x3c0] ss:$16 sps:$4 sm:$0xff]  }
 0x189   :  { %1844 = vmatpush2.bf16.msra.mxu1 %v4017_v30  ;;  %2690 = vmatprep.subr.bf16.mxu0 %v4046_v33  ;;  %v4136_v30 = vld [vmem:[#allocation6 + $0x3e4] ss:$16 sps:$4 sm:$0xff]   ;;  %v4146_v33 = vld [vmem:[#allocation6 + $0x3a0] ss:$16 sps:$4 sm:$0xff]  }
 0x18a   :  { %1845 = vmatprep.subr.bf16.mxu1 %v4022_v32  ;;  %v4142_v32 = vld [vmem:[#allocation6 + $0x3c4] ss:$16 sps:$4 sm:$0xff]  }
 0x18c   :  { %2691 = vmatpush1.bf16.msra.mxu0 %v4044_v36  ;;  %v4152_v36 = vld [vmem:[#allocation6 + $0x380] ss:$16 sps:$4 sm:$0xff]  }
 0x18d   :  { %1846 = vmatpush2.bf16.msra.mxu1 %v4020_v34  ;;  %2692 = vmatprep.subr.bf16.mxu0 %v4049_v38  ;;  %v4148_v34 = vld [vmem:[#allocation6 + $0x3a4] ss:$16 sps:$4 sm:$0xff]   ;;  %v4158_v38 = vld [vmem:[#allocation6 + $0x360] ss:$16 sps:$4 sm:$0xff]  }
 0x18e   :  { %1847 = vmatprep.subr.bf16.mxu1 %v4025_v37  ;;  %v4154_v37 = vld [vmem:[#allocation6 + $0x384] ss:$16 sps:$4 sm:$0xff]  }
 0x190   :  { %2693 = vmatpush1.bf16.msra.mxu0 %v4047_v8  ;;  %v4166_v8 = vld [vmem:[#allocation6 + $0x344] ss:$16 sps:$4 sm:$0xff]  }
 0x191   :  { %1848 = vmatpush2.bf16.msra.mxu1 %v4023_v39  ;;  %2694 = vmatprep.subr.bf16.mxu0 %v4052_v43  ;;  %v4160_v39 = vld [vmem:[#allocation6 + $0x364] ss:$16 sps:$4 sm:$0xff]  }
 0x192   :  { %1849 = vmatprep.subr.bf16.mxu1 %v4028_v40  ;;  %v4164_v40 = vld [vmem:[#allocation6 + $0x340] ss:$16 sps:$4 sm:$0xff]   ;;  %v4172_v43 = vld [vmem:[#allocation6 + $0x324] ss:$16 sps:$4 sm:$0xff]  }
 0x194   :  { %2695 = vmatpush1.bf16.msra.mxu0 %v4050_v45  ;;  %v4178_v45 = vld [vmem:[#allocation6 + $0x304] ss:$16 sps:$4 sm:$0xff]  }
 0x195   :  { %1850 = vmatpush2.bf16.msra.mxu1 %v4026_v44  ;;  %2696 = vmatprep.subr.bf16.mxu0 %v4055_v47  ;;  %v4170_v44 = vld [vmem:[#allocation6 + $0x320] ss:$16 sps:$4 sm:$0xff]   ;;  %v4184_v47 = vld [vmem:[#allocation6 + $0x2ec] ss:$16 sps:$4 sm:$0xff]  }
 0x196   :  { %1851 = vmatprep.subr.bf16.mxu1 %v4031_v46  ;;  %v4176_v46 = vld [vmem:[#allocation6 + $0x300] ss:$16 sps:$4 sm:$0xff]  }
 0x198   :  { %2697 = vmatpush1.bf16.msra.mxu0 %v4053_v49 }
 0x199   :  { %1852 = vmatpush2.bf16.msra.mxu1 %v4029_v48  ;;  %2698 = vmatprep.subr.bf16.mxu0 %v4058_v51 }
 0x19a   :  { %1853 = vmatprep.subr.bf16.mxu1 %v4034_v50  ;;  %v4464_v50 = vld [vmem:[%s4499_s4] sm:$0xf] }
 0x19b   :  { %v1043_v51 = vrot.slane %v4464_v50, %v4440_v42 }
 0x19c   :  { %2699 = vmatpush1.bf16.msra.mxu0 %v4056_v52 }
 0x19d   :  { %1854 = vmatpush2.bf16.msra.mxu1 %v4032_v35  ;;  %2700 = vmatprep.subr.bf16.mxu0 %v4061_v54  ;;  %v1039_v35 = vrot.slane %v4464_v50, %v4438_v41 }
 0x19e   :  { %1855 = vmatprep.subr.bf16.mxu1 %v4037_v53 }
 0x1a0   :  { %2701 = vmatpush1.bf16.msra.mxu0 %v4059_v57 }
 0x1a1   :  { %1856 = vmatpush2.bf16.msra.mxu1 %v4035_v55  ;;  %2702 = vmatprep.subr.bf16.mxu0 %v4064_v58 }
 0x1a2   :  { %2729 = vmatprep.subr.bf16.mxu1 %v4088_v5 }
 0x1a4   :  { %1858 = vmatmul.mubr.bf16.vlgmr.msra.gmra.mxu1 %v4456_v56  ;;  %2703 = vmatpush2.bf16.msra.mxu0 %v4062_v59  ;;  %v4079_v56 = vld [vmem:[#allocation6 + $0x144] ss:$16 sps:$4 sm:$0xff]  }
 0x1a5   :  { %2704 = vmatprep.subr.bf16.mxu0 %v4067_v60  ;;  %2730 = vmatpush1.bf16.msra.mxu1 %v4086_v4 }
 0x1a6   :  { %2731 = vmatprep.subr.bf16.mxu1 %v4094_v9 }
 0x1a8   :  { %2705 = vmatpush2.bf16.msra.mxu0 %v4065_v61 }
 0x1a9   :  { %2706 = vmatprep.subr.bf16.mxu0 %v4070_v62  ;;  %2732 = vmatpush1.bf16.msra.mxu1 %v4092_v7 }
 0x1aa   :  { %2733 = vmatprep.subr.bf16.mxu1 %v4100_v13  ;;  %v4089_v13 = vld [vmem:[#allocation6 + $0xe8] ss:$16 sps:$4 sm:$0xff]  }
 0x1ac   :  { %2707 = vmatpush2.bf16.msra.mxu0 %v4068_v63 }
 0x1ad   :  { %2708 = vmatprep.subr.bf16.mxu0 %v4073_v1  ;;  %2734 = vmatpush1.bf16.msra.mxu1 %v4098_v12 }
 0x1ae   :  { %2735 = vmatprep.subr.bf16.mxu1 %v4106_v19  ;;  %v4103_v19 = vld [vmem:[#allocation6 + $0xac] ss:$16 sps:$4 sm:$0xff]  }
 0x1b0   :  { %2709 = vmatpush2.bf16.msra.mxu0 %v4071_v2 }
 0x1b1   :  { %2710 = vmatprep.subr.bf16.mxu0 %v4076_v3  ;;  %2736 = vmatpush1.bf16.msra.mxu1 %v4104_v18  ;;  %v4095_v18 = vld [vmem:[#allocation6 + $0xc8] ss:$16 sps:$4 sm:$0xff]  }
 0x1b2   :  { %2737 = vmatprep.subr.bf16.mxu1 %v4112_v23  ;;  %v4115_v23 = vld [vmem:[#allocation6 + $0x6c] ss:$16 sps:$4 sm:$0xff]  }
 0x1b4   :  { %2711 = vmatpush2.bf16.msra.mxu0 %v4074_v6 }
 0x1b5   :  { %2712 = vmatprep.subr.bf16.mxu0 %v4079_v56  ;;  %2738 = vmatpush1.bf16.msra.mxu1 %v4110_v22  ;;  %v4107_v22 = vld [vmem:[#allocation6 + $0x88] ss:$16 sps:$4 sm:$0xff]  }
 0x1b6   :  { %2739 = vmatprep.subr.bf16.mxu1 %v4118_v24  ;;  %v4113_v24 = vld [vmem:[#allocation6 + $0x68] ss:$16 sps:$4 sm:$0xff]  }
 0x1b8   :  { %2713 = vmatpush2.bf16.msra.mxu0 %v4077_v10 }
 0x1b9   :  { %2714 = vmatprep.subr.bf16.mxu0 %v4082_v11  ;;  %2740 = vmatpush1.bf16.msra.mxu1 %v4116_v25  ;;  %v4121_v25 = vld [vmem:[#allocation6 + $0x4c] ss:$16 sps:$4 sm:$0xff]  }
 0x1ba   :  { %2741 = vmatprep.subr.bf16.mxu1 %v4124_v26  ;;  %v4119_v26 = vld [vmem:[#allocation6 + $0x48] ss:$16 sps:$4 sm:$0xff]  }
 0x1bc   :  { %2715 = vmatpush2.bf16.msra.mxu0 %v4080_v14 }
 0x1bd   :  { %2716 = vmatprep.subr.bf16.mxu0 %v4085_v17  ;;  %2742 = vmatpush1.bf16.msra.mxu1 %v4122_v0  ;;  %v4097_v17 = vld [vmem:[#allocation6 + $0xcc] ss:$16 sps:$4 sm:$0xff]  }
 0x1be   :  { %2743 = vmatprep.subr.bf16.mxu1 %v4130_v28  ;;  %v4127_v0 = vld [vmem:[#allocation6 + $0x2c] ss:$16 sps:$4 sm:$0xff]  }
 0x1bf   :  { %v4133_v28 = vld [vmem:[#allocation6 + $0xc] ss:$16 sps:$4 sm:$0xff]  }
 0x1c0   :  { %2717 = vmatpush2.bf16.msra.mxu0 %v4083_v20  ;;  %v4101_v20 = vld [vmem:[#allocation6 + $0xa8] ss:$16 sps:$4 sm:$0xff]  }
 0x1c1   :  { %2772 = vmatprep.subr.bf16.mxu0 %v4091_v21  ;;  %2744 = vmatpush1.bf16.msra.mxu1 %v4128_v27  ;;  %v4109_v21 = vld [vmem:[#allocation6 + $0x8c] ss:$16 sps:$4 sm:$0xff]   ;;  %v4125_v27 = vld [vmem:[#allocation6 + $0x28] ss:$16 sps:$4 sm:$0xff]  }
 0x1c2   :  { %2745 = vmatprep.subr.bf16.mxu1 %v4136_v30  ;;  %v4139_v30 = vld [vmem:[#allocation6 + $0x1ec] ss:$16 sps:$4 sm:$0xff]  }
 0x1c5   :  { %2746 = vmatpush2.bf16.msra.mxu1 %v4134_v29  ;;  %v4131_v29 = vld [vmem:[#allocation6 + $0x8] ss:$16 sps:$4 sm:$0xff]  }
 0x1c6   :  { %2747 = vmatprep.subr.bf16.mxu1 %v4142_v32  ;;  %v4145_v32 = vld [vmem:[#allocation6 + $0x1cc] ss:$16 sps:$4 sm:$0xff]  }
 0x1c9   :  { %2748 = vmatpush2.bf16.msra.mxu1 %v4140_v31  ;;  %v4137_v31 = vld [vmem:[#allocation6 + $0x1e8] ss:$16 sps:$4 sm:$0xff]  }
 0x1ca   :  { %2749 = vmatprep.subr.bf16.mxu1 %v4148_v34  ;;  %v4151_v34 = vld [vmem:[#allocation6 + $0x1ac] ss:$16 sps:$4 sm:$0xff]  }
 0x1cd   :  { %2750 = vmatpush2.bf16.msra.mxu1 %v4146_v33  ;;  %v4143_v33 = vld [vmem:[#allocation6 + $0x1c8] ss:$16 sps:$4 sm:$0xff]  }
 0x1ce   :  { %2751 = vmatprep.subr.bf16.mxu1 %v4154_v37  ;;  %v4157_v37 = vld [vmem:[#allocation6 + $0x18c] ss:$16 sps:$4 sm:$0xff]  }
 0x1d1   :  { %2752 = vmatpush2.bf16.msra.mxu1 %v4152_v36  ;;  %v4149_v36 = vld [vmem:[#allocation6 + $0x1a8] ss:$16 sps:$4 sm:$0xff]  }
 0x1d2   :  { %2753 = vmatprep.subr.bf16.mxu1 %v4160_v39  ;;  %v4155_v39 = vld [vmem:[#allocation6 + $0x188] ss:$16 sps:$4 sm:$0xff]  }
 0x1d5   :  { %2754 = vmatpush2.bf16.msra.mxu1 %v4158_v38 }
 0x1d6   :  { %2755 = vmatprep.subr.bf16.mxu1 %v4166_v8  ;;  %v4163_v8 = vld [vmem:[#allocation6 + $0x16c] ss:$16 sps:$4 sm:$0xff]  }
 0x1d9   :  { %2756 = vmatpush2.bf16.msra.mxu1 %v4164_v40 }
 0x1da   :  { %2757 = vmatprep.subr.bf16.mxu1 %v4172_v43  ;;  %v4161_v43 = vld [vmem:[#allocation6 + $0x168] ss:$16 sps:$4 sm:$0xff]  }
 0x1dd   :  { %2758 = vmatpush2.bf16.msra.mxu1 %v4170_v44  ;;  %v1051_v44 = vrot.slane %v4464_v50, %v4452_v16 }
 0x1de   :  { %2759 = vmatprep.subr.bf16.mxu1 %v4178_v45  ;;  %v4169_v45 = vld [vmem:[#allocation6 + $0x14c] ss:$16 sps:$4 sm:$0xff]  }
 0x1e1   :  { %2760 = vmatpush2.bf16.msra.mxu1 %v4176_v46  ;;  %v1047_v46 = vrot.slane %v4464_v50, %v4450_v15  ;;  %v4181_v50 = vld [vmem:[#allocation6 + $0x10c] ss:$16 sps:$4 sm:$0xff]  }
 0x1e2   :  { %2815 = vmatprep.subr.bf16.mxu1 %v4184_v47 }
 0x203   :  { %v1730_v48 = vpop.f32.mrf.mxu0 }
 0x204   :  { %v1731_v55 = vadd.f32 %v1730_v48, %v1039_v35 }
 0x205   :  { %v1732_v49 = vpop.f32.mrf.mxu0 }
 0x206   :  { %v1733_v54 = vadd.f32 %v1732_v49, %v1043_v51  ;;  %v4167_v49 = vld [vmem:[#allocation6 + $0x148] ss:$16 sps:$4 sm:$0xff]  }
 0x207   :  { %v1734_v52 = vpop.f32.mrf.mxu0 }
 0x208   :  { %v1735_v59 = vadd.f32 %v1734_v52, %v1039_v35  ;;  %v4175_v35 = vld [vmem:[#allocation6 + $0x12c] ss:$16 sps:$4 sm:$0xff]  }
 0x209   :  { %v1736_v57 = vpop.f32.mrf.mxu0 }
 0x20a   :  { %v1737_v63 = vadd.f32 %v1736_v57, %v1043_v51 }
 0x224   :  { %v1773_v53 = vpop.f32.mrf.mxu1 }
 0x225   :  { %v1774_v61 = vadd.f32 %v1773_v53, %v1731_v55 }
 0x226   :  { %v1775_v58 = vpop.f32.mrf.mxu1 }
 0x227   :  { %v1776_v60 = vadd.f32 %v1775_v58, %v1733_v54  ;;  %v1876_v6 = vmul.f32 0.2, %v1774_v61  ;;  %vm1868_vm10 = vcmp.gt.f32.partialorder %v1774_v61, 0.0 }
 0x228   :  { %v1777_v62 = vpop.f32.mrf.mxu1 }
 0x229   :  { %v1778_v1 = vadd.f32 %v1777_v62, %v1735_v59  ;;  %v1877_v3 = vmul.f32 0.2, %v1776_v60  ;;  %vm1869_vm9 = vcmp.gt.f32.partialorder %v1776_v60, 0.0  ;;  %v1884_v11 = vsel %vm1868_vm10, %v1774_v61, %v1876_v6 }
 0x22a   :  { %v1779_v2 = vpop.f32.mrf.mxu1 }
 0x22b   :  { %vm1872_vm8 = vcmp.gt.f32.partialorder %v1778_v1, 0.0  ;;  %v1880_v4 = vmul.f32 0.2, %v1778_v1  ;;  %v1780_v5 = vadd.f32 %v1779_v2, %v1737_v63  ;;  %v1885_v9 = vsel %vm1869_vm9, %v1776_v60, %v1877_v3  ;;  %v4173_v60 = vld [vmem:[#allocation6 + $0x128] ss:$16 sps:$4 sm:$0xff]  }
 0x22d   :  { %vm1873_vm11 = vcmp.gt.f32.partialorder %v1780_v5, 0.0  ;;  %v1881_v56 = vmul.f32 0.2, %v1780_v5  ;;  %v1888_v7 = vsel %vm1872_vm8, %v1778_v1, %v1880_v4 }
 0x22e   :  { %v4470_v14 = vpack.c.bf16 %v1888_v7, %v1884_v11 }
 0x22f   :  { %v1889_v10 = vsel %vm1873_vm11, %v1780_v5, %v1881_v56  ;;  %v4179_v5 = vld [vmem:[#allocation6 + $0x108] ss:$16 sps:$4 sm:$0xff]  }
 0x230   :  { %v1893_v12 = vpack.c.bf16 %v1889_v10, %v1885_v9 }
 0x232   :  { %2718 = vmatprep.mubr.bf16.mxu0 %v1893_v12 }
 0x233   :  { %2719 = vmatmul.mubr.bf16.vlgmr.msra.gmra.mxu0 %v4470_v14 }
 0x234   :  { %2773 = vmatpush1.bf16.msra.mxu0 %v4089_v13  ;;  %2804 = vmatprep.mubr.bf16.mxu0 %v1893_v12  ;;  %v4182_v12 = vld [vmem:[#allocation6 + $0x2e8] ss:$16 sps:$4 sm:$0xff]  }
 0x235   :  { %2774 = vmatprep.subr.bf16.mxu0 %v4097_v17  ;;  %v4187_v17 = vld [vmem:[#allocation6 + $0x2cc] ss:$16 sps:$4 sm:$0xff]  }
 0x238   :  { %2775 = vmatpush1.bf16.msra.mxu0 %v4095_v18  ;;  %v4185_v18 = vld [vmem:[#allocation6 + $0x2c8] ss:$16 sps:$4 sm:$0xff]  }
 0x239   :  { %2776 = vmatprep.subr.bf16.mxu0 %v4103_v19  ;;  %v4190_v19 = vld [vmem:[#allocation6 + $0x2ac] ss:$16 sps:$4 sm:$0xff]  }
 0x23c   :  { %2777 = vmatpush1.bf16.msra.mxu0 %v4101_v20  ;;  %v4188_v20 = vld [vmem:[#allocation6 + $0x2a8] ss:$16 sps:$4 sm:$0xff]  }
 0x23d   :  { %2778 = vmatprep.subr.bf16.mxu0 %v4109_v21  ;;  %v4193_v21 = vld [vmem:[#allocation6 + $0x28c] ss:$16 sps:$4 sm:$0xff]  }
 0x240   :  { %2779 = vmatpush1.bf16.msra.mxu0 %v4107_v22  ;;  %v4230_v22 = vld [vmem:[#allocation7 + $0x78] sm:$0xff]  }
 0x241   :  { %2780 = vmatprep.subr.bf16.mxu0 %v4115_v23  ;;  %v4231_v23 = vld [vmem:[#allocation7 + $0x38] sm:$0xff]  }
 0x243   :  { %v1816_v38 = vpop.f32.mrf.mxu0 }
 0x244   :  { %2781 = vmatpush1.bf16.msra.mxu0 %v4113_v24  ;;  %v1817_v52 = vadd.f32 %v1816_v38, %v1047_v46  ;;  %v4232_v24 = vld [vmem:[#allocation7 + $0x70] sm:$0xff]   ;;  %v4203_v38 = vld [vmem:[#allocation6 + $0x208] ss:$16 sps:$4 sm:$0xff]  }
 0x245   :  { %2782 = vmatprep.subr.bf16.mxu0 %v4121_v25  ;;  %v1818_v40 = vpop.f32.mrf.mxu0  ;;  %v4191_v25 = vld [vmem:[#allocation6 + $0x288] ss:$16 sps:$4 sm:$0xff]  }
 0x246   :  { %v1819_v51 = vadd.f32 %v1818_v40, %v1051_v44  ;;  %v4211_v40 = vld [vmem:[#allocation6 + $0x3cc] ss:$16 sps:$4 sm:$0xff]  }
 0x247   :  { %v1820_v47 = vpop.f32.mrf.mxu0 }
 0x248   :  { %2783 = vmatpush1.bf16.msra.mxu0 %v4119_v26  ;;  %v1821_v55 = vadd.f32 %v1820_v47, %v1047_v46  ;;  %v4196_v26 = vld [vmem:[#allocation6 + $0x26c] ss:$16 sps:$4 sm:$0xff]   ;;  %v4215_v47 = vld [vmem:[#allocation6 + $0x388] ss:$16 sps:$4 sm:$0xff]  }
 0x249   :  { %2784 = vmatprep.subr.bf16.mxu0 %v4127_v0  ;;  %v1822_v53 = vpop.f32.mrf.mxu0  ;;  %v4233_v0 = vld [vmem:[#allocation7 + $0x30] sm:$0xff]   ;;  %v4217_v46 = vld [vmem:[#allocation6 + $0x38c] ss:$16 sps:$4 sm:$0xff]  }
 0x24a   :  { %v1823_v61 = vadd.f32 %v1822_v53, %v1051_v44  ;;  %v4214_v44 = vld [vmem:[#allocation6 + $0x3ac] ss:$16 sps:$4 sm:$0xff]   ;;  %v4224_v53 = vld [vmem:[#allocation6 + $0x328] ss:$16 sps:$4 sm:$0xff]  }
 0x24c   :  { %2785 = vmatpush1.bf16.msra.mxu0 %v4125_v27  ;;  %v4194_v27 = vld [vmem:[#allocation6 + $0x268] ss:$16 sps:$4 sm:$0xff]  }
 0x24d   :  { %2786 = vmatprep.subr.bf16.mxu0 %v4133_v28  ;;  %v4199_v28 = vld [vmem:[#allocation6 + $0x24c] ss:$16 sps:$4 sm:$0xff]  }
 0x250   :  { %2787 = vmatpush1.bf16.msra.mxu0 %v4131_v29  ;;  %v4235_v29 = vld [vmem:[#allocation7 + $0x28] sm:$0xff]  }
 0x251   :  { %2788 = vmatprep.subr.bf16.mxu0 %v4139_v30  ;;  %v4236_v30 = vld [vmem:[#allocation7 + $0x60] sm:$0xff]  }
 0x254   :  { %2789 = vmatpush2.bf16.msra.mxu0 %v4137_v31  ;;  %v4197_v31 = vld [vmem:[#allocation6 + $0x248] ss:$16 sps:$4 sm:$0xff]  }
 0x255   :  { %2790 = vmatprep.subr.bf16.mxu0 %v4145_v32  ;;  %v4202_v32 = vld [vmem:[#allocation6 + $0x22c] ss:$16 sps:$4 sm:$0xff]  }
 0x258   :  { %2791 = vmatpush2.bf16.msra.mxu0 %v4143_v33  ;;  %v4237_v33 = vld [vmem:[#allocation7 + $0x20] sm:$0xff]  }
 0x259   :  { %2792 = vmatprep.subr.bf16.mxu0 %v4151_v34  ;;  %v4238_v34 = vld [vmem:[#allocation7 + $0x58] sm:$0xff]  }
 0x25c   :  { %2793 = vmatpush2.bf16.msra.mxu0 %v4149_v36  ;;  %v4200_v36 = vld [vmem:[#allocation6 + $0x228] ss:$16 sps:$4 sm:$0xff]  }
 0x25d   :  { %2794 = vmatprep.subr.bf16.mxu0 %v4157_v37  ;;  %v4205_v37 = vld [vmem:[#allocation6 + $0x20c] ss:$16 sps:$4 sm:$0xff]  }
 0x260   :  { %2795 = vmatpush2.bf16.msra.mxu0 %v4155_v39  ;;  %v4208_v39 = vld [vmem:[#allocation6 + $0x3ec] ss:$16 sps:$4 sm:$0xff]  }
 0x261   :  { %2796 = vmatprep.subr.bf16.mxu0 %v4163_v8  ;;  %v4206_v8 = vld [vmem:[#allocation6 + $0x3e8] ss:$16 sps:$4 sm:$0xff]  }
 0x264   :  { %v1859_v48 = vpop.f32.mrf.mxu1  ;;  %2797 = vmatpush2.bf16.msra.mxu0 %v4161_v43  ;;  %v4209_v43 = vld [vmem:[#allocation6 + $0x3c8] ss:$16 sps:$4 sm:$0xff]  }
 0x265   :  { %2798 = vmatprep.subr.bf16.mxu0 %v4169_v45  ;;  %v1860_v58 = vadd.f32 %v1859_v48, %v1817_v52  ;;  %v4212_v45 = vld [vmem:[#allocation6 + $0x3a8] ss:$16 sps:$4 sm:$0xff]   ;;  %v4220_v48 = vld [vmem:[#allocation6 + $0x36c] ss:$16 sps:$4 sm:$0xff]  }
 0x266   :  { %v1861_v54 = vpop.f32.mrf.mxu1  ;;  %v4226_v52 = vld [vmem:[#allocation6 + $0x32c] ss:$16 sps:$4 sm:$0xff]  }
 0x267   :  { %v1862_v57 = vadd.f32 %v1861_v54, %v1819_v51  ;;  %v1878_v4 = vmul.f32 0.2, %v1860_v58  ;;  %vm1870_vm14 = vcmp.gt.f32.partialorder %v1860_v58, 0.0  ;;  %v4223_v51 = vld [vmem:[#allocation6 + $0x34c] ss:$16 sps:$4 sm:$0xff]  }
 0x268   :  { %v1863_v59 = vpop.f32.mrf.mxu1  ;;  %2799 = vmatpush2.bf16.msra.mxu0 %v4167_v49  ;;  %v4218_v49 = vld [vmem:[#allocation6 + $0x368] ss:$16 sps:$4 sm:$0xff]   ;;  %v4229_v54 = vld [vmem:[#allocation6 + $0x30c] ss:$16 sps:$4 sm:$0xff]  }
 0x269   :  { %v1864_v62 = vadd.f32 %v1863_v59, %v1821_v55  ;;  %2800 = vmatprep.subr.bf16.mxu0 %v4175_v35  ;;  %v1879_v1 = vmul.f32 0.2, %v1862_v57  ;;  %vm1871_vm13 = vcmp.gt.f32.partialorder %v1862_v57, 0.0  ;;  %v1886_v10 = vsel %vm1870_vm14, %v1860_v58, %v1878_v4  ;;  %v4221_v35 = vld [vmem:[#allocation6 + $0x348] ss:$16 sps:$4 sm:$0xff]   ;;  %v4240_v58 = vld [vmem:[#allocation7 + $0x50] sm:$0xff]  }
 0x26a   :  { %v1865_v63 = vpop.f32.mrf.mxu1  ;;  %v4227_v55 = vld [vmem:[#allocation6 + $0x308] ss:$16 sps:$4 sm:$0xff]   ;;  %v4241_v59 = vld [vmem:[#allocation7 + $0x10] sm:$0xff]  }
 0x26b   :  { %vm1874_vm12 = vcmp.gt.f32.partialorder %v1864_v62, 0.0  ;;  %v1882_v2 = vmul.f32 0.2, %v1864_v62  ;;  %v1866_v3 = vadd.f32 %v1865_v63, %v1823_v61  ;;  %v1887_v7 = vsel %vm1871_vm13, %v1862_v57, %v1879_v1  ;;  %v4239_v57 = vld [vmem:[#allocation7 + $0x18] sm:$0xff]   ;;  %v4243_v61 = vld [vmem:[#allocation7 + $0x8] sm:$0xff]  }
 0x26c   :  { %2801 = vmatpush2.bf16.msra.mxu0 %v4173_v60  ;;  %v4242_v60 = vld [vmem:[#allocation7 + $0x48] sm:$0xff]   ;;  %v4246_v63 = vld [vmem:[#allocation7 + $0xf8] sm:$0xff]  }
 0x26d   :  { %vm1875_vm15 = vcmp.gt.f32.partialorder %v1866_v3, 0.0  ;;  %v1883_v6 = vmul.f32 0.2, %v1866_v3  ;;  %2802 = vmatprep.subr.bf16.mxu0 %v4181_v50  ;;  %v1890_v56 = vsel %vm1874_vm12, %v1864_v62, %v1882_v2  ;;  %v4244_v62 = vld [vmem:[#allocation7 + $0x40] sm:$0xff]   ;;  %v4247_v1 = vld [vmem:[#allocation7 + $0xb8] sm:$0xff]   ;;  %v4248_v2 = vld [vmem:[#allocation7 + $0xf0] sm:$0xff]  }
 0x26e   :  { %v4477_v13 = vpack.c.bf16 %v1890_v56, %v1886_v10  ;;  %v4245_v50 = vld [vmem:[#allocation7] sm:$0xff]   ;;  %v4250_v4 = vld [vmem:[#allocation7 + $0xe8] sm:$0xff]   ;;  %v4256_v10 = vld [vmem:[#allocation7 + $0xd0] sm:$0xff]  }
 0x26f   :  { %v1891_v9 = vsel %vm1875_vm15, %v1866_v3, %v1883_v6  ;;  %v4249_v3 = vld [vmem:[#allocation7 + $0xb0] sm:$0xff]   ;;  %v4252_v6 = vld [vmem:[#allocation7 + $0xe0] sm:$0xff]  }
 0x270   :  { %2803 = vmatpush2.bf16.msra.mxu0 %v4179_v5  ;;  %v1895_v11 = vpack.c.bf16 %v1891_v9, %v1887_v7  ;;  %v4251_v5 = vld [vmem:[#allocation7 + $0xa8] sm:$0xff]   ;;  %v4253_v56 = vld [vmem:[#allocation7 + $0xa0] sm:$0xff]   ;;  %v4254_v7 = vld [vmem:[#allocation7 + $0xd8] sm:$0xff]  }
 0x271   :  { %3645 = vmatprep.subr.bf16.mxu0 %v4230_v22  ;;  %v4255_v9 = vld [vmem:[#allocation7 + $0x98] sm:$0xff]  }
 0x272   :  { %2761 = vmatprep.mubr.bf16.mxu1 %v1895_v11 }
 0x273   :  { %2762 = vmatmul.mubr.bf16.vlgmr.msra.gmra.mxu1 %v4477_v13  ;;  %2805 = vmatmul.mubr.bf16.vlgmr.msra.gmra.mxu0 %v4470_v14  ;;  %v4234_v14 = vld [vmem:[#allocation7 + $0x68] sm:$0xff]  }
 0x274   :  { %2816 = vmatpush1.bf16.msra.mxu1 %v4182_v12  ;;  %2847 = vmatprep.mubr.bf16.mxu1 %v1895_v11  ;;  %v4257_v11 = vld [vmem:[#allocation7 + $0x90] sm:$0xff]   ;;  %v4258_v12 = vld [vmem:[#allocation7 + $0xc8] sm:$0xff]  }
 0x275   :  { %2817 = vmatprep.subr.bf16.mxu1 %v4187_v17  ;;  %3646 = vmatpush3.bf16.msra.mxu0 %v4231_v23  ;;  %v4260_v17 = vld [vmem:[#allocation7 + $0xc0] sm:$0xff]  }
 0x276   :  { %3647 = vmatprep.subr.bf16.mxu0 %v4232_v24 }
 0x278   :  { %2818 = vmatpush1.bf16.msra.mxu1 %v4185_v18  ;;  %v4261_v18 = vld [vmem:[#allocation7 + $0x80] sm:$0xff]  }
 0x279   :  { %2819 = vmatprep.subr.bf16.mxu1 %v4190_v19  ;;  %3648 = vmatpush3.bf16.msra.mxu0 %v4233_v0 }
 0x27a   :  { %3649 = vmatprep.subr.bf16.mxu0 %v4234_v14 }
 0x27c   :  { %2820 = vmatpush1.bf16.msra.mxu1 %v4188_v20 }
 0x27d   :  { %2821 = vmatprep.subr.bf16.mxu1 %v4193_v21  ;;  %3650 = vmatpush3.bf16.msra.mxu0 %v4235_v29  ;;  %v2024_v21 = vld [vmem:[%s4501_s6] sm:$0xf] }
 0x27e   :  { %3651 = vmatprep.subr.bf16.mxu0 %v4236_v30  ;;  %v2033_v22 = vrot.slane %v2024_v21, %v4440_v42  ;;  %v2029_v23 = vrot.slane %v2024_v21, %v4438_v41 }
 0x280   :  { %2822 = vmatpush1.bf16.msra.mxu1 %v4191_v25 }
 0x281   :  { %2823 = vmatprep.subr.bf16.mxu1 %v4196_v26  ;;  %3652 = vmatpush3.bf16.msra.mxu0 %v4237_v33 }
 0x282   :  { %3653 = vmatprep.subr.bf16.mxu0 %v4238_v34 }
 0x284   :  { %2824 = vmatpush1.bf16.msra.mxu1 %v4194_v27 }
 0x285   :  { %2825 = vmatprep.subr.bf16.mxu1 %v4199_v28  ;;  %3654 = vmatpush3.bf16.msra.mxu0 %v4239_v57 }
 0x286   :  { %3655 = vmatprep.subr.bf16.mxu0 %v4240_v58 }
 0x288   :  { %2826 = vmatpush1.bf16.msra.mxu1 %v4197_v31 }
 0x289   :  { %2827 = vmatprep.subr.bf16.mxu1 %v4202_v32  ;;  %3656 = vmatpush3.bf16.msra.mxu0 %v4241_v59 }
 0x28a   :  { %3657 = vmatprep.subr.bf16.mxu0 %v4242_v60 }
 0x28c   :  { %2828 = vmatpush1.bf16.msra.mxu1 %v4200_v36 }
 0x28d   :  { %2829 = vmatprep.subr.bf16.mxu1 %v4205_v37  ;;  %3658 = vmatpush3.bf16.msra.mxu0 %v4243_v61 }
 0x28e   :  { %3659 = vmatprep.subr.bf16.mxu0 %v4244_v62 }
 0x290   :  { %2830 = vmatpush1.bf16.msra.mxu1 %v4203_v38 }
 0x291   :  { %2831 = vmatprep.subr.bf16.mxu1 %v4208_v39  ;;  %3660 = vmatpush3.bf16.msra.mxu0 %v4245_v50 }
 0x294   :  { %2832 = vmatpush2.bf16.msra.mxu1 %v4206_v8 }
 0x295   :  { %2833 = vmatprep.subr.bf16.mxu1 %v4211_v40 }
 0x298   :  { %2834 = vmatpush2.bf16.msra.mxu1 %v4209_v43 }
 0x299   :  { %2835 = vmatprep.subr.bf16.mxu1 %v4214_v44 }
 0x29c   :  { %2836 = vmatpush2.bf16.msra.mxu1 %v4212_v45 }
 0x29d   :  { %2837 = vmatprep.subr.bf16.mxu1 %v4217_v46 }
 0x2a0   :  { %2838 = vmatpush2.bf16.msra.mxu1 %v4215_v47 }
 0x2a1   :  { %2839 = vmatprep.subr.bf16.mxu1 %v4220_v48  ;;  %v2041_v48 = vrot.slane %v2024_v21, %v4452_v16 }
 0x2a4   :  { %2840 = vmatpush2.bf16.msra.mxu1 %v4218_v49  ;;  %v2037_v49 = vrot.slane %v2024_v21, %v4450_v15 }
 0x2a5   :  { %2841 = vmatprep.subr.bf16.mxu1 %v4223_v51 }
 0x2a8   :  { %2842 = vmatpush2.bf16.msra.mxu1 %v4221_v35 }
 0x2a9   :  { %2843 = vmatprep.subr.bf16.mxu1 %v4226_v52 }
 0x2ac   :  { %2844 = vmatpush2.bf16.msra.mxu1 %v4224_v53 }
 0x2ad   :  { %2845 = vmatprep.subr.bf16.mxu1 %v4229_v54 }
 0x2b0   :  { %2846 = vmatpush2.bf16.msra.mxu1 %v4227_v55 }
 0x2b1   :  { %3667 = vmatprep.subr.bf16.mxu1 %v4246_v63 }
 0x2b3   :  { %2848 = vmatmul.mubr.bf16.vlgmr.msra.gmra.mxu1 %v4477_v13  ;;  %v4259_v13 = vld [vmem:[#allocation7 + $0x88] sm:$0xff]  }
 0x2b4   :  { %3668 = vmatpush3.bf16.msra.mxu1 %v4247_v1 }
 0x2b5   :  { %3669 = vmatprep.subr.bf16.mxu1 %v4248_v2 }
 0x2b8   :  { %3670 = vmatpush3.bf16.msra.mxu1 %v4249_v3 }
 0x2b9   :  { %3671 = vmatprep.subr.bf16.mxu1 %v4250_v4 }
 0x2bc   :  { %3672 = vmatpush3.bf16.msra.mxu1 %v4251_v5 }
 0x2bd   :  { %3673 = vmatprep.subr.bf16.mxu1 %v4252_v6 }
 0x2c0   :  { %3674 = vmatpush3.bf16.msra.mxu1 %v4253_v56 }
 0x2c1   :  { %3675 = vmatprep.subr.bf16.mxu1 %v4254_v7 }
 0x2c4   :  { %3676 = vmatpush3.bf16.msra.mxu1 %v4255_v9 }
 0x2c5   :  { %3677 = vmatprep.subr.bf16.mxu1 %v4256_v10 }
 0x2c8   :  { %3678 = vmatpush3.bf16.msra.mxu1 %v4257_v11 }
 0x2c9   :  { %3679 = vmatprep.subr.bf16.mxu1 %v4258_v12 }
 0x2cc   :  { %3680 = vmatpush3.bf16.msra.mxu1 %v4259_v13 }
 0x2cd   :  { %3681 = vmatprep.subr.bf16.mxu1 %v4260_v17 }
 0x2d0   :  { %3682 = vmatpush3.bf16.msra.mxu1 %v4261_v18 }
 0x2f3   :  { %v2720_v19 = vpop.f32.mrf.mxu0 }
 0x2f4   :  { %v2721_v0 = vadd.f32 %v2720_v19, %v2029_v23 }
 0x2f5   :  { %v2722_v20 = vpop.f32.mrf.mxu0 }
 0x2f6   :  { %v2723_v26 = vadd.f32 %v2722_v20, %v2033_v22  ;;  %v3603_v20 = vld [vmem:[%s4503_s8] ss:$0 sm:$0xff] }
 0x2f7   :  { %v2724_v24 = vpop.f32.mrf.mxu0 }
 0x2f8   :  { %v2725_v28 = vadd.f32 %v2724_v24, %v2029_v23 }
 0x2f9   :  { %v2726_v14 = vpop.f32.mrf.mxu0 }
 0x2fa   :  { %v2727_v32 = vadd.f32 %v2726_v14, %v2033_v22 }
 0x333   :  { %v2763_v25 = vpop.f32.mrf.mxu1  ;;  %v2806_v46 = vpop.f32.mrf.mxu0 }
 0x334   :  { %v2764_v30 = vadd.f32 %v2763_v25, %v2721_v0  ;;  %v2807_v53 = vadd.f32 %v2806_v46, %v2037_v49 }
 0x335   :  { %v2765_v27 = vpop.f32.mrf.mxu1  ;;  %v2808_v47 = vpop.f32.mrf.mxu0 }
 0x336   :  { %v2766_v29 = vadd.f32 %v2765_v27, %v2723_v26  ;;  %v2866_v42 = vmul.f32 0.2, %v2764_v30  ;;  %vm2858_vm2 = vcmp.gt.f32.partialorder %v2764_v30, 0.0  ;;  %v2809_v52 = vadd.f32 %v2808_v47, %v2041_v48 }
 0x337   :  { %v2767_v31 = vpop.f32.mrf.mxu1  ;;  %v2810_v51 = vpop.f32.mrf.mxu0 }
 0x338   :  { %v2768_v33 = vadd.f32 %v2767_v31, %v2725_v28  ;;  %v2867_v36 = vmul.f32 0.2, %v2766_v29  ;;  %vm2859_vm1 = vcmp.gt.f32.partialorder %v2766_v29, 0.0  ;;  %v2874_v43 = vsel %vm2858_vm2, %v2764_v30, %v2866_v42 }
 0x339   :  { %v2769_v34 = vpop.f32.mrf.mxu1  ;;  %v2812_v54 = vpop.f32.mrf.mxu0  ;;  %v2811_v57 = vadd.f32 %v2810_v51, %v2037_v49 }
 0x33a   :  { %vm2862_vm0 = vcmp.gt.f32.partialorder %v2768_v33, 0.0  ;;  %v2870_v37 = vmul.f32 0.2, %v2768_v33  ;;  %v2770_v38 = vadd.f32 %v2769_v34, %v2727_v32  ;;  %v2875_v8 = vsel %vm2859_vm1, %v2766_v29, %v2867_v36 }
 0x33b   :  { %v2813_v61 = vadd.f32 %v2812_v54, %v2041_v48 }
 0x33c   :  { %vm2863_vm3 = vcmp.gt.f32.partialorder %v2770_v38, 0.0  ;;  %v2871_v41 = vmul.f32 0.2, %v2770_v38  ;;  %v2878_v39 = vsel %vm2862_vm0, %v2768_v33, %v2870_v37 }
 0x33d   :  { %v2882_v45 = vpack.c.bf16 %v2878_v39, %v2874_v43 }
 0x33e   :  { %v2879_v40 = vsel %vm2863_vm3, %v2770_v38, %v2871_v41 }
 0x33f   :  { %v2883_v44 = vpack.c.bf16 %v2879_v40, %v2875_v8 }
 0x341   :  { %3181 = vmatprep.mubr.bf16.mxu0 %v2883_v44 }
 0x342   :  { %3182 = vmatmul.mubr.bf16.vlgmr.msra.gmra.mxu0 %v2882_v45 }
 0x373   :  { %v2849_v35 = vpop.f32.mrf.mxu1 }
 0x374   :  { %v2850_v59 = vadd.f32 %v2849_v35, %v2807_v53 }
 0x375   :  { %v2851_v55 = vpop.f32.mrf.mxu1 }
 0x376   :  { %v2852_v58 = vadd.f32 %v2851_v55, %v2809_v52  ;;  %v2868_v16 = vmul.f32 0.2, %v2850_v59  ;;  %vm2860_vm6 = vcmp.gt.f32.partialorder %v2850_v59, 0.0 }
 0x377   :  { %v2853_v60 = vpop.f32.mrf.mxu1 }
 0x378   :  { %v2854_v62 = vadd.f32 %v2853_v60, %v2811_v57  ;;  %v2869_v63 = vmul.f32 0.2, %v2852_v58  ;;  %vm2861_vm5 = vcmp.gt.f32.partialorder %v2852_v58, 0.0  ;;  %v2876_v6 = vsel %vm2860_vm6, %v2850_v59, %v2868_v16 }
 0x379   :  { %v2855_v50 = vpop.f32.mrf.mxu1 }
 0x37a   :  { %vm2864_vm4 = vcmp.gt.f32.partialorder %v2854_v62, 0.0  ;;  %v2872_v1 = vmul.f32 0.2, %v2854_v62  ;;  %v2856_v2 = vadd.f32 %v2855_v50, %v2813_v61  ;;  %v2877_v4 = vsel %vm2861_vm5, %v2852_v58, %v2869_v63 }
 0x37c   :  { %vm2865_vm7 = vcmp.gt.f32.partialorder %v2856_v2, 0.0  ;;  %v2873_v15 = vmul.f32 0.2, %v2856_v2  ;;  %v2880_v3 = vsel %vm2864_vm4, %v2854_v62, %v2872_v1 }
 0x37d   :  { %v2884_v7 = vpack.c.bf16 %v2880_v3, %v2876_v6 }
 0x37e   :  { %v2881_v5 = vsel %vm2865_vm7, %v2856_v2, %v2873_v15 }
 0x37f   :  { %v2885_v56 = vpack.c.bf16 %v2881_v5, %v2877_v4 }
 0x381   :  { %3222 = vmatprep.mubr.bf16.mxu1 %v2885_v56 }
 0x382   :  { %3223 = vmatmul.mubr.bf16.vlgmr.msra.gmra.mxu1 %v2884_v7 }
 0x402   :  { %v3661_v9 = vpop.f32.mrf.mxu0 }
 0x404   :  { %v3662_v10 = vpop.f32.mrf.mxu0 }
 0x405   :  { %v3663_v18 = vadd.f32 %v3662_v10, %v3661_v9 }
 0x406   :  { %v3664_v11 = vpop.f32.mrf.mxu0 }
 0x407   :  { %v3184_v24 = vadd.f32 %v3663_v18, %v3603_v20 }
 0x408   :  { %v3665_v12 = vpop.f32.mrf.mxu0 }
 0x409   :  { %v3666_v19 = vadd.f32 %v3665_v12, %v3664_v11 }
 0x40b   :  { %v3187_v25 = vadd.f32 %v3666_v19, %v3603_v20 }
 0x442   :  { %v3683_v13 = vpop.f32.mrf.mxu1 }
 0x444   :  { %v3684_v17 = vpop.f32.mrf.mxu1 }
 0x445   :  { %v3685_v22 = vadd.f32 %v3684_v17, %v3683_v13 }
 0x446   :  { %v3686_v21 = vpop.f32.mrf.mxu1 }
 0x447   :  { %v3225_v0 = vadd.f32 %v3685_v22, %v3184_v24 }
 0x448   :  { %v3687_v23 = vpop.f32.mrf.mxu1 }
 0x449   :  { %v3688_v26 = vadd.f32 %v3687_v23, %v3686_v21 }
 0x44b   :  { %v3228_v14 = vadd.f32 %v3688_v26, %v3187_v25 }
 0x44d   :  { %v3643_v27 = vpack.c.bf16 %v3228_v14, %v3225_v0 }
 0x44f   :  { %3644 = vst [vmem:[%s4504_s9] sm:$0xff] %v3643_v27  }
 0x450   :  { %3245 = vsyncpa [#allocation3], 1 }
 0x451   :  { %3246 = vsyncpa [#allocation5], 1 }
 0x452   :  { %3247 = vsyncpa [#allocation8], 1 }

</bundles_post_ra>
